<compile_context>
chip_gen: v7x
topology: tpu7x:2x2x1
jax: 0.10.0
libtpu: 0.0.40
codegen_flags: <defaults>
</compile_context>

<pallas_src>
import numpy as np
import jax
import jax.numpy as jnp
from jax.experimental import pallas as pl
from jax.experimental.pallas import tpu as pltpu

# ------------------------- static config -------------------------
STATE_DIM = 4
REF_OBS_DIM = 3
PRE_HORIZON = 8            # sequence length T
HIDDEN_DIM = 32
NUM_LAYERS = 2
ACT_DIM = 2
BATCH = 2
INPUT_DIM = STATE_DIM + REF_OBS_DIM                 # 7
OBS_DIM = STATE_DIM + PRE_HORIZON * REF_OBS_DIM     # 28

SLAB_LANES = 128
GATES = 3 * HIDDEN_DIM                              # 96, fused [r|z|n] lane layout
IN_PAD = ((INPUT_DIM + 7) // 8) * 8                 # 8 (layer-0 K padded to sublane)
assert GATES <= SLAB_LANES


def _round8(x):
    return ((x + 7) // 8) * 8


def _build_slab_offsets():
    """Row offsets of every parameter block inside the packed (rows, 128) slab."""
    off = {}
    row = 0
    for layer in range(NUM_LAYERS):
        k_in = IN_PAD if layer == 0 else HIDDEN_DIM
        off[f"wih{layer}"] = row; row += k_in         # (k_in, 96)  fused input weights
        off[f"whh{layer}"] = row; row += HIDDEN_DIM   # (H, 96)     fused hidden weights
    off["fc_w"] = row; row += HIDDEN_DIM              # (H, 128)    fc weight, lane padded
    off["bias"] = row                                 # per layer: gi_bias row, bhh_n row
    row += _round8(2 * NUM_LAYERS + 3)                # + fc_b, scale, offset rows
    return off, row


SLAB_OFF, SLAB_ROWS = _build_slab_offsets()


# ------------------------- parameter packing (done once) -------------------------
def pack_params(params):
    """Pack all GRU / FC parameters into one lane-aligned (SLAB_ROWS, 128) f32 slab.

    Gate lane layout is [r | z | n] (32 lanes each).  The r / z hidden biases are
    folded into the input-projection bias (PyTorch adds them pre-sigmoid); bhh_n
    stays separate because it must remain inside the r * (.) term.
    """
    H = HIDDEN_DIM
    slab = jnp.zeros((SLAB_ROWS, SLAB_LANES), jnp.float32)
    for layer in range(NUM_LAYERS):
        wih = params[f"wih{layer}"]          # (3H, in) rows [r; z; n]
        whh = params[f"whh{layer}"]          # (3H, H)
        bih = params[f"bih{layer}"]          # (3H,)
        bhh = params[f"bhh{layer}"]          # (3H,)

        wih_f = jnp.concatenate([wih[:H].T, wih[H:2 * H].T, wih[2 * H:].T], axis=1)  # (in, 96)
        whh_f = jnp.concatenate([whh[:H].T, whh[H:2 * H].T, whh[2 * H:].T], axis=1)  # (H, 96)

        r0 = SLAB_OFF[f"wih{layer}"]
        slab = slab.at[r0:r0 + wih_f.shape[0], :GATES].set(wih_f)
        r1 = SLAB_OFF[f"whh{layer}"]
        slab = slab.at[r1:r1 + H, :GATES].set(whh_f)

        gi_bias = jnp.concatenate(
            [bih[:H] + bhh[:H], bih[H:2 * H] + bhh[H:2 * H], bih[2 * H:]])           # (96,)
        rb = SLAB_OFF["bias"] + 2 * layer
        slab = slab.at[rb, :GATES].set(gi_bias)
        slab = slab.at[rb + 1, :H].set(bhh[2 * H:])                                  # bhh_n

    rf = SLAB_OFF["fc_w"]
    slab = slab.at[rf:rf + H, :ACT_DIM].set(params["fc_w"].T)                        # (H, A)
    rb = SLAB_OFF["bias"] + 2 * NUM_LAYERS
    slab = slab.at[rb, :ACT_DIM].set(params["fc_b"])
    slab = slab.at[rb + 1, :ACT_DIM].set(params["scale"][0])
    slab = slab.at[rb + 2, :ACT_DIM].set(params["offset"][0])
    return slab


# ------------------------- Pallas kernel -------------------------
def make_gru_policy_kernel(num_layers, seq_len, b_pad, hidden, in_pad, off):
    """Kernel: obs -> state_ref rows -> multi-layer GRU (h0=0) -> Linear -> scaled tanh."""
    T, B, H, G = seq_len, b_pad, hidden, 3 * hidden
    bias0 = off["bias"]

    def kernel(obs_ref, w_ref, out_ref, xbuf, hbuf):
        f32 = jnp.float32

        # ---- fold build_state_ref into the kernel: layer-0 input sequence,
        #      time-major, B_pad rows per step, lanes padded to in_pad.
        state = obs_ref[:, :STATE_DIM]                                  # (B, 4)
        parts_pad = in_pad - STATE_DIM - REF_OBS_DIM
        for t in range(T):
            lo_t = STATE_DIM + REF_OBS_DIM * t
            traj_t = obs_ref[:, lo_t:lo_t + REF_OBS_DIM]                # (B, 3)
            parts = [state, traj_t]
            if parts_pad > 0:
                parts.append(jnp.zeros((B, parts_pad), f32))
            xbuf[t * B:(t + 1) * B, :in_pad] = jnp.concatenate(parts, axis=1)

        src, dst = xbuf, hbuf
        k_in = in_pad
        for layer in range(num_layers):
            # Unpack this layer's slab blocks (hoisted loads, static row slices).
            wih = w_ref[off[f"wih{layer}"]:off[f"wih{layer}"] + k_in, :G]       # (k_in, 96)
            whh = w_ref[off[f"whh{layer}"]:off[f"whh{layer}"] + H, :G]          # (H, 96)
            gi_bias = w_ref[bias0 + 2 * layer:bias0 + 2 * layer + 1, :G]        # (1, 96)
            bhh_n = w_ref[bias0 + 2 * layer + 1:bias0 + 2 * layer + 2, :H]      # (1, H)
            bhh_n_b = jnp.broadcast_to(bhh_n, (B, H))                           # hoisted

            # Batched input projection for all timesteps (off the serial chain),
            # r/z hidden biases already folded into gi_bias.
            x = src[:, :k_in]                                                   # (T*B, k_in)
            gi = jnp.dot(x, wih, preferred_element_type=f32) + gi_bias          # (T*B, 96)

            h = jnp.zeros((B, H), f32)
            for t in range(T):                                # fully unrolled (T static)
                lo = t * B
                gi_t = gi[lo:lo + B]                          # (B, 96), sublane-aligned
                if t == 0:
                    # h0 == 0: skip the gh matmul entirely.
                    rz = jax.nn.sigmoid(gi_t[:, :2 * H])      # packed r|z
                    r, z = rz[:, :H], rz[:, H:2 * H]
                    n = jnp.tanh(gi_t[:, 2 * H:G] + r * bhh_n_b)
                    h = n - z * n
                else:
                    # Single fused hidden matmul per step (1 MXU push/pop).
                    gh = jnp.dot(h, whh, preferred_element_type=f32)            # (B, 96)
                    rz = jax.nn.sigmoid(gi_t[:, :2 * H] + gh[:, :2 * H])
                    r, z = rz[:, :H], rz[:, H:2 * H]
                    n = jnp.tanh(gi_t[:, 2 * H:G] + r * (gh[:, 2 * H:G] + bhh_n_b))
                    h = n + z * (h - n)
                dst[lo:lo + B, :H] = h                        # aligned per-step store

            src, dst = dst, src                               # ping-pong (static)
            k_in = H

        # ---- batched final Linear + tanh + scale/offset, 128-lane padded so the
        #      single output store is an unmasked vst (wrapper slices A=2 off).
        fc_w = w_ref[off["fc_w"]:off["fc_w"] + H, :]                            # (H, 128)
        rb = bias0 + 2 * num_layers
        fc_b = w_ref[rb:rb + 1, :]
        scale = w_ref[rb + 1:rb + 2, :]
        offset = w_ref[rb + 2:rb + 3, :]
        hN = src[:, :H]                                                          # (T*B, H)
        logits = jnp.dot(hN, fc_w, preferred_element_type=f32) + fc_b
        out_ref[...] = scale * jnp.tanh(logits) + offset

    return kernel


# ------------------------- wrapper (hot path) -------------------------
@jax.jit
def forward_all_policy(obs, slab):
    """Equivalent of GRUFullPolicy.forward_all_policy(obs) -> [B, T, act_dim]."""
    b = obs.shape[0]
    t = (obs.shape[1] - STATE_DIM) // REF_OBS_DIM
    b_pad = max(8, _round8(b))                       # sublane-align the batch

    obs_pad = jnp.zeros((b_pad, obs.shape[1]), jnp.float32).at[:b, :].set(
        obs.astype(jnp.float32))

    kernel = make_gru_policy_kernel(NUM_LAYERS, t, b_pad, HIDDEN_DIM, IN_PAD, SLAB_OFF)
    vmem = pl.BlockSpec(memory_space=pltpu.MemorySpace.VMEM)
    lanes = max(HIDDEN_DIM, IN_PAD)

    out = pl.pallas_call(
        kernel,
        out_shape=jax.ShapeDtypeStruct((t * b_pad, SLAB_LANES), jnp.float32),
        in_specs=[vmem, vmem],
        out_specs=vmem,
        scratch_shapes=[pltpu.VMEM((t * b_pad, lanes), jnp.float32),
                        pltpu.VMEM((t * b_pad, lanes), jnp.float32)],
    )(obs_pad, slab)

    act = out.reshape(t, b_pad, SLAB_LANES)[:, :b, :ACT_DIM]      # (T, B, A)
    return jnp.transpose(act, (1, 0, 2))                          # (B, T, A)


@jax.jit
def forward(obs, slab):
    """Equivalent of GRUFullPolicy.forward(obs) -> [B, act_dim]."""
    return forward_all_policy(obs, slab)[:, 0, :]


# ------------------------- reference (pure JAX, from raw params) -------------------------
def build_state_ref(obs):
    b = obs.shape[0]
    state = obs[:, :STATE_DIM]
    trajectory = obs[:, STATE_DIM:].reshape(b, -1, REF_OBS_DIM)
    t = trajectory.shape[1]
    state_expanded = jnp.broadcast_to(state[:, None, :], (b, t, STATE_DIM))
    return jnp.concatenate([state_expanded, trajectory], axis=2).astype(jnp.float32)


def reference_forward_all(obs, params):
    state_ref = build_state_ref(obs)
    b, t, _ = state_ref.shape
    H = HIDDEN_DIM
    seq = state_ref
    for layer in range(NUM_LAYERS):
        wih = params[f"wih{layer}"]
        whh = params[f"whh{layer}"]
        bih = params[f"bih{layer}"]
        bhh = params[f"bhh{layer}"]

        def step(h_prev, x_t, wih=wih, whh=whh, bih=bih, bhh=bhh):
            gi = x_t @ wih.T + bih
            gh = h_prev @ whh.T + bhh
            r = jax.nn.sigmoid(gi[:, :H] + gh[:, :H])
            z = jax.nn.sigmoid(gi[:, H:2 * H] + gh[:, H:2 * H])
            n = jnp.tanh(gi[:, 2 * H:] + r * gh[:, 2 * H:])
            h_new = (1.0 - z) * n + z * h_prev
            return h_new, h_new

        h0 = jnp.zeros((b, H), jnp.float32)
        _, outs = jax.lax.scan(step, h0, jnp.transpose(seq, (1, 0, 2)))
        seq = jnp.transpose(outs, (1, 0, 2))

    logits = seq @ params["fc_w"].T + params["fc_b"]
    return params["scale"] * jnp.tanh(logits) + params["offset"]


# ------------------------- deterministic parameters -------------------------
def init_params(key):
    params = {}
    bound = 1.0 / np.sqrt(HIDDEN_DIM)

    def unif(k, shape, bnd):
        return jax.random.uniform(k, shape, jnp.float32, -bnd, bnd)

    keys = jax.random.split(key, 4 * NUM_LAYERS + 2)
    ki = 0
    for layer in range(NUM_LAYERS):
        in_dim = INPUT_DIM if layer == 0 else HIDDEN_DIM
        params[f"wih{layer}"] = unif(keys[ki], (3 * HIDDEN_DIM, in_dim), bound); ki += 1
        params[f"whh{layer}"] = unif(keys[ki], (3 * HIDDEN_DIM, HIDDEN_DIM), bound); ki += 1
        params[f"bih{layer}"] = unif(keys[ki], (3 * HIDDEN_DIM,), bound); ki += 1
        params[f"bhh{layer}"] = unif(keys[ki], (3 * HIDDEN_DIM,), bound); ki += 1

    params["fc_w"] = unif(keys[ki], (ACT_DIM, HIDDEN_DIM), bound); ki += 1
    params["fc_b"] = unif(keys[ki], (ACT_DIM,), bound); ki += 1

    act_high = jnp.array([[1.0, 2.0]], jnp.float32)        # act_high_lim
    act_low = jnp.array([[-1.0, 0.0]], jnp.float32)        # act_low_lim
    params["scale"] = (act_high - act_low) / 2.0
    params["offset"] = (act_high + act_low) / 2.0
    return params


# ------------------------- main -------------------------
if __name__ == "__main__":
    key = jax.random.PRNGKey(0)
    k_param, k_obs = jax.random.split(key)

    params = init_params(k_param)
    slab = jax.block_until_ready(pack_params(params))       # packed once, off the hot path
    obs = jax.random.normal(k_obs, (BATCH, OBS_DIM), jnp.float32)

    all_actions = jax.block_until_ready(forward_all_policy(obs, slab))   # (B, T, A)
    action = jax.block_until_ready(forward(obs, slab))                   # (B, A)

    ref_all = jax.block_until_ready(reference_forward_all(obs, params))
    np.testing.assert_allclose(np.asarray(all_actions), np.asarray(ref_all),
                               rtol=1e-4, atol=1e-4)
    np.testing.assert_allclose(np.asarray(action), np.asarray(ref_all[:, 0, :]),
                               rtol=1e-4, atol=1e-4)

    print("KERNEL_OK")
</pallas_src>

<mosaic_0001>
module attributes {stable_mosaic.version = 11 : i64} {
  func.func @kernel(%arg0: memref<8x28xf32, #tpu.memory_space<vmem>>, %arg1: memref<144x128xf32, #tpu.memory_space<vmem>>, %arg2: memref<64x128xf32, #tpu.memory_space<vmem>>, %arg3: memref<64x32xf32, #tpu.memory_space<vmem>>, %arg4: memref<64x32xf32, #tpu.memory_space<vmem>>) attributes {dimension_semantics = [], scalar_prefetch = 0 : i64, scratch_operands = 2 : i64, tpu.core_type = #tpu.core_type<tc>} {
    %c0 = arith.constant 0 : index
    %c0_0 = arith.constant 0 : index
    %0 = vector.load %arg0[%c0, %c0_0] : memref<8x28xf32, #tpu.memory_space<vmem>>, vector<8x4xf32>
    %c0_1 = arith.constant 0 : index
    %c4 = arith.constant 4 : index
    %1 = vector.load %arg0[%c0_1, %c4] : memref<8x28xf32, #tpu.memory_space<vmem>>, vector<8x3xf32>
    %cst = arith.constant 0.000000e+00 : f32
    %2 = vector.broadcast %cst : f32 to vector<8x1xf32>
    %3 = tpu.concatenate %0, %1, %2 in 1 : vector<8x4xf32>, vector<8x3xf32>, vector<8x1xf32> -> vector<8x8xf32>
    %c0_2 = arith.constant 0 : index
    %c0_3 = arith.constant 0 : index
    %4 = vector.load %arg3[%c0_2, %c0_3] : memref<64x32xf32, #tpu.memory_space<vmem>>, vector<8x8xf32>
    tpu.vector_store %arg3[%c0_2, %c0_3], %3 {strides = array<i32>} : memref<64x32xf32, #tpu.memory_space<vmem>>, vector<8x8xf32>,
    %c0_4 = arith.constant 0 : index
    %c7 = arith.constant 7 : index
    %5 = vector.load %arg0[%c0_4, %c7] : memref<8x28xf32, #tpu.memory_space<vmem>>, vector<8x3xf32>
    %cst_5 = arith.constant 0.000000e+00 : f32
    %6 = vector.broadcast %cst_5 : f32 to vector<8x1xf32>
    %7 = tpu.concatenate %0, %5, %6 in 1 : vector<8x4xf32>, vector<8x3xf32>, vector<8x1xf32> -> vector<8x8xf32>
    %c8 = arith.constant 8 : index
    %c0_6 = arith.constant 0 : index
    %8 = vector.load %arg3[%c8, %c0_6] : memref<64x32xf32, #tpu.memory_space<vmem>>, vector<8x8xf32>
    tpu.vector_store %arg3[%c8, %c0_6], %7 {strides = array<i32>} : memref<64x32xf32, #tpu.memory_space<vmem>>, vector<8x8xf32>,
    %c0_7 = arith.constant 0 : index
    %c10 = arith.constant 10 : index
    %9 = vector.load %arg0[%c0_7, %c10] : memref<8x28xf32, #tpu.memory_space<vmem>>, vector<8x3xf32>
    %cst_8 = arith.constant 0.000000e+00 : f32
    %10 = vector.broadcast %cst_8 : f32 to vector<8x1xf32>
    %11 = tpu.concatenate %0, %9, %10 in 1 : vector<8x4xf32>, vector<8x3xf32>, vector<8x1xf32> -> vector<8x8xf32>
    %c16 = arith.constant 16 : index
    %c0_9 = arith.constant 0 : index
    %12 = vector.load %arg3[%c16, %c0_9] : memref<64x32xf32, #tpu.memory_space<vmem>>, vector<8x8xf32>
    tpu.vector_store %arg3[%c16, %c0_9], %11 {strides = array<i32>} : memref<64x32xf32, #tpu.memory_space<vmem>>, vector<8x8xf32>,
    %c0_10 = arith.constant 0 : index
    %c13 = arith.constant 13 : index
    %13 = vector.load %arg0[%c0_10, %c13] : memref<8x28xf32, #tpu.memory_space<vmem>>, vector<8x3xf32>
    %cst_11 = arith.constant 0.000000e+00 : f32
    %14 = vector.broadcast %cst_11 : f32 to vector<8x1xf32>
    %15 = tpu.concatenate %0, %13, %14 in 1 : vector<8x4xf32>, vector<8x3xf32>, vector<8x1xf32> -> vector<8x8xf32>
    %c24 = arith.constant 24 : index
    %c0_12 = arith.constant 0 : index
    %16 = vector.load %arg3[%c24, %c0_12] : memref<64x32xf32, #tpu.memory_space<vmem>>, vector<8x8xf32>
    tpu.vector_store %arg3[%c24, %c0_12], %15 {strides = array<i32>} : memref<64x32xf32, #tpu.memory_space<vmem>>, vector<8x8xf32>,
    %c0_13 = arith.constant 0 : index
    %c16_14 = arith.constant 16 : index
    %17 = vector.load %arg0[%c0_13, %c16_14] : memref<8x28xf32, #tpu.memory_space<vmem>>, vector<8x3xf32>
    %cst_15 = arith.constant 0.000000e+00 : f32
    %18 = vector.broadcast %cst_15 : f32 to vector<8x1xf32>
    %19 = tpu.concatenate %0, %17, %18 in 1 : vector<8x4xf32>, vector<8x3xf32>, vector<8x1xf32> -> vector<8x8xf32>
    %c32 = arith.constant 32 : index
    %c0_16 = arith.constant 0 : index
    %20 = vector.load %arg3[%c32, %c0_16] : memref<64x32xf32, #tpu.memory_space<vmem>>, vector<8x8xf32>
    tpu.vector_store %arg3[%c32, %c0_16], %19 {strides = array<i32>} : memref<64x32xf32, #tpu.memory_space<vmem>>, vector<8x8xf32>,
    %c0_17 = arith.constant 0 : index
    %c19 = arith.constant 19 : index
    %21 = vector.load %arg0[%c0_17, %c19] : memref<8x28xf32, #tpu.memory_space<vmem>>, vector<8x3xf32>
    %cst_18 = arith.constant 0.000000e+00 : f32
    %22 = vector.broadcast %cst_18 : f32 to vector<8x1xf32>
    %23 = tpu.concatenate %0, %21, %22 in 1 : vector<8x4xf32>, vector<8x3xf32>, vector<8x1xf32> -> vector<8x8xf32>
    %c40 = arith.constant 40 : index
    %c0_19 = arith.constant 0 : index
    %24 = vector.load %arg3[%c40, %c0_19] : memref<64x32xf32, #tpu.memory_space<vmem>>, vector<8x8xf32>
    tpu.vector_store %arg3[%c40, %c0_19], %23 {strides = array<i32>} : memref<64x32xf32, #tpu.memory_space<vmem>>, vector<8x8xf32>,
    %c0_20 = arith.constant 0 : index
    %c22 = arith.constant 22 : index
    %25 = vector.load %arg0[%c0_20, %c22] : memref<8x28xf32, #tpu.memory_space<vmem>>, vector<8x3xf32>
    %cst_21 = arith.constant 0.000000e+00 : f32
    %26 = vector.broadcast %cst_21 : f32 to vector<8x1xf32>
    %27 = tpu.concatenate %0, %25, %26 in 1 : vector<8x4xf32>, vector<8x3xf32>, vector<8x1xf32> -> vector<8x8xf32>
    %c48 = arith.constant 48 : index
    %c0_22 = arith.constant 0 : index
    %28 = vector.load %arg3[%c48, %c0_22] : memref<64x32xf32, #tpu.memory_space<vmem>>, vector<8x8xf32>
    tpu.vector_store %arg3[%c48, %c0_22], %27 {strides = array<i32>} : memref<64x32xf32, #tpu.memory_space<vmem>>, vector<8x8xf32>,
    %c0_23 = arith.constant 0 : index
    %c25 = arith.constant 25 : index
    %29 = vector.load %arg0[%c0_23, %c25] : memref<8x28xf32, #tpu.memory_space<vmem>>, vector<8x3xf32>
    %cst_24 = arith.constant 0.000000e+00 : f32
    %30 = vector.broadcast %cst_24 : f32 to vector<8x1xf32>
    %31 = tpu.concatenate %0, %29, %30 in 1 : vector<8x4xf32>, vector<8x3xf32>, vector<8x1xf32> -> vector<8x8xf32>
    %c56 = arith.constant 56 : index
    %c0_25 = arith.constant 0 : index
    %32 = vector.load %arg3[%c56, %c0_25] : memref<64x32xf32, #tpu.memory_space<vmem>>, vector<8x8xf32>
    tpu.vector_store %arg3[%c56, %c0_25], %31 {strides = array<i32>} : memref<64x32xf32, #tpu.memory_space<vmem>>, vector<8x8xf32>,
    %c0_26 = arith.constant 0 : index
    %c0_27 = arith.constant 0 : index
    %33 = vector.load %arg1[%c0_26, %c0_27] : memref<144x128xf32, #tpu.memory_space<vmem>>, vector<8x96xf32>
    %c8_28 = arith.constant 8 : index
    %c0_29 = arith.constant 0 : index
    %34 = vector.load %arg1[%c8_28, %c0_29] : memref<144x128xf32, #tpu.memory_space<vmem>>, vector<32x96xf32>
    %c136 = arith.constant 136 : index
    %c0_30 = arith.constant 0 : index
    %35 = vector.load %arg1[%c136, %c0_30] : memref<144x128xf32, #tpu.memory_space<vmem>>, vector<1x96xf32>
    %c137 = arith.constant 137 : index
    %c0_31 = arith.constant 0 : index
    %36 = vector.load %arg1[%c137, %c0_31] : memref<144x128xf32, #tpu.memory_space<vmem>>, vector<1x32xf32>
    %37 = vector.shape_cast %36 : vector<1x32xf32> to vector<1x32xf32>
    %38 = vector.broadcast %37 : vector<1x32xf32> to vector<8x32xf32>
    %c0_32 = arith.constant 0 : index
    %c0_33 = arith.constant 0 : index
    %39 = vector.load %arg3[%c0_32, %c0_33] : memref<64x32xf32, #tpu.memory_space<vmem>>, vector<64x8xf32>
    %cst_34 = arith.constant dense<0.000000e+00> : vector<64x96xf32>
    %40 = tpu.matmul %39, %33, %cst_34 {dimension_numbers = #tpu.dot_dimension_numbers<[1], [0], [0], [1], [0, 0, 1, 1], [], []>} : vector<64x8xf32>, vector<8x96xf32>, vector<64x96xf32> -> vector<64x96xf32>
    %41 = vector.broadcast %35 : vector<1x96xf32> to vector<64x96xf32>
    %42 = arith.addf %40, %41 : vector<64x96xf32>
    %43 = vector.extract_strided_slice %42 {offsets = [0, 0], sizes = [8, 96], strides = [1, 1]} : vector<64x96xf32> to vector<8x96xf32>
    %44 = vector.extract_strided_slice %43 {offsets = [0, 0], sizes = [8, 64], strides = [1, 1]} : vector<8x96xf32> to vector<8x64xf32>
    %45 = arith.negf %44 : vector<8x64xf32>
    %46 = math.exp %45 : vector<8x64xf32>
    %cst_35 = arith.constant 1.000000e+00 : f32
    %47 = vector.broadcast %cst_35 : f32 to vector<8x64xf32>
    %48 = arith.addf %47, %46 : vector<8x64xf32>
    %49 = arith.divf %47, %48 : vector<8x64xf32>
    %50 = vector.extract_strided_slice %49 {offsets = [0, 0], sizes = [8, 32], strides = [1, 1]} : vector<8x64xf32> to vector<8x32xf32>
    %51 = vector.extract_strided_slice %49 {offsets = [0, 32], sizes = [8, 32], strides = [1, 1]} : vector<8x64xf32> to vector<8x32xf32>
    %52 = vector.extract_strided_slice %43 {offsets = [0, 64], sizes = [8, 32], strides = [1, 1]} : vector<8x96xf32> to vector<8x32xf32>
    %53 = arith.mulf %50, %38 : vector<8x32xf32>
    %54 = arith.addf %52, %53 : vector<8x32xf32>
    %55 = math.tanh %54 : vector<8x32xf32>
    %56 = arith.mulf %51, %55 : vector<8x32xf32>
    %57 = arith.subf %55, %56 : vector<8x32xf32>
    %c0_36 = arith.constant 0 : index
    %c0_37 = arith.constant 0 : index
    %58 = vector.load %arg4[%c0_36, %c0_37] : memref<64x32xf32, #tpu.memory_space<vmem>>, vector<8x32xf32>
    tpu.vector_store %arg4[%c0_36, %c0_37], %57 {strides = array<i32>} : memref<64x32xf32, #tpu.memory_space<vmem>>, vector<8x32xf32>,
    %59 = vector.extract_strided_slice %42 {offsets = [8, 0], sizes = [8, 96], strides = [1, 1]} : vector<64x96xf32> to vector<8x96xf32>
    %cst_38 = arith.constant dense<0.000000e+00> : vector<8x96xf32>
    %60 = tpu.matmul %57, %34, %cst_38 {dimension_numbers = #tpu.dot_dimension_numbers<[1], [0], [0], [1], [0, 0, 1, 1], [], []>} : vector<8x32xf32>, vector<32x96xf32>, vector<8x96xf32> -> vector<8x96xf32>
    %61 = vector.extract_strided_slice %59 {offsets = [0, 0], sizes = [8, 64], strides = [1, 1]} : vector<8x96xf32> to vector<8x64xf32>
    %62 = vector.extract_strided_slice %60 {offsets = [0, 0], sizes = [8, 64], strides = [1, 1]} : vector<8x96xf32> to vector<8x64xf32>
    %63 = arith.addf %61, %62 : vector<8x64xf32>
    %64 = arith.negf %63 : vector<8x64xf32>
    %65 = math.exp %64 : vector<8x64xf32>
    %cst_39 = arith.constant 1.000000e+00 : f32
    %66 = vector.broadcast %cst_39 : f32 to vector<8x64xf32>
    %67 = arith.addf %66, %65 : vector<8x64xf32>
    %68 = arith.divf %66, %67 : vector<8x64xf32>
    %69 = vector.extract_strided_slice %68 {offsets = [0, 0], sizes = [8, 32], strides = [1, 1]} : vector<8x64xf32> to vector<8x32xf32>
    %70 = vector.extract_strided_slice %68 {offsets = [0, 32], sizes = [8, 32], strides = [1, 1]} : vector<8x64xf32> to vector<8x32xf32>
    %71 = vector.extract_strided_slice %59 {offsets = [0, 64], sizes = [8, 32], strides = [1, 1]} : vector<8x96xf32> to vector<8x32xf32>
    %72 = vector.extract_strided_slice %60 {offsets = [0, 64], sizes = [8, 32], strides = [1, 1]} : vector<8x96xf32> to vector<8x32xf32>
    %73 = arith.addf %72, %38 : vector<8x32xf32>
    %74 = arith.mulf %69, %73 : vector<8x32xf32>
    %75 = arith.addf %71, %74 : vector<8x32xf32>
    %76 = math.tanh %75 : vector<8x32xf32>
    %77 = arith.subf %57, %76 : vector<8x32xf32>
    %78 = arith.mulf %70, %77 : vector<8x32xf32>
    %79 = arith.addf %76, %78 : vector<8x32xf32>
    %c8_40 = arith.constant 8 : index
    %c0_41 = arith.constant 0 : index
    %80 = vector.load %arg4[%c8_40, %c0_41] : memref<64x32xf32, #tpu.memory_space<vmem>>, vector<8x32xf32>
    tpu.vector_store %arg4[%c8_40, %c0_41], %79 {strides = array<i32>} : memref<64x32xf32, #tpu.memory_space<vmem>>, vector<8x32xf32>,
    %81 = vector.extract_strided_slice %42 {offsets = [16, 0], sizes = [8, 96], strides = [1, 1]} : vector<64x96xf32> to vector<8x96xf32>
    %cst_42 = arith.constant dense<0.000000e+00> : vector<8x96xf32>
    %82 = tpu.matmul %79, %34, %cst_42 {dimension_numbers = #tpu.dot_dimension_numbers<[1], [0], [0], [1], [0, 0, 1, 1], [], []>} : vector<8x32xf32>, vector<32x96xf32>, vector<8x96xf32> -> vector<8x96xf32>
    %83 = vector.extract_strided_slice %81 {offsets = [0, 0], sizes = [8, 64], strides = [1, 1]} : vector<8x96xf32> to vector<8x64xf32>
    %84 = vector.extract_strided_slice %82 {offsets = [0, 0], sizes = [8, 64], strides = [1, 1]} : vector<8x96xf32> to vector<8x64xf32>
    %85 = arith.addf %83, %84 : vector<8x64xf32>
    %86 = arith.negf %85 : vector<8x64xf32>
    %87 = math.exp %86 : vector<8x64xf32>
    %cst_43 = arith.constant 1.000000e+00 : f32
    %88 = vector.broadcast %cst_43 : f32 to vector<8x64xf32>
    %89 = arith.addf %88, %87 : vector<8x64xf32>
    %90 = arith.divf %88, %89 : vector<8x64xf32>
    %91 = vector.extract_strided_slice %90 {offsets = [0, 0], sizes = [8, 32], strides = [1, 1]} : vector<8x64xf32> to vector<8x32xf32>
    %92 = vector.extract_strided_slice %90 {offsets = [0, 32], sizes = [8, 32], strides = [1, 1]} : vector<8x64xf32> to vector<8x32xf32>
    %93 = vector.extract_strided_slice %81 {offsets = [0, 64], sizes = [8, 32], strides = [1, 1]} : vector<8x96xf32> to vector<8x32xf32>
    %94 = vector.extract_strided_slice %82 {offsets = [0, 64], sizes = [8, 32], strides = [1, 1]} : vector<8x96xf32> to vector<8x32xf32>
    %95 = arith.addf %94, %38 : vector<8x32xf32>
    %96 = arith.mulf %91, %95 : vector<8x32xf32>
    %97 = arith.addf %93, %96 : vector<8x32xf32>
    %98 = math.tanh %97 : vector<8x32xf32>
    %99 = arith.subf %79, %98 : vector<8x32xf32>
    %100 = arith.mulf %92, %99 : vector<8x32xf32>
    %101 = arith.addf %98, %100 : vector<8x32xf32>
    %c16_44 = arith.constant 16 : index
    %c0_45 = arith.constant 0 : index
    %102 = vector.load %arg4[%c16_44, %c0_45] : memref<64x32xf32, #tpu.memory_space<vmem>>, vector<8x32xf32>
    tpu.vector_store %arg4[%c16_44, %c0_45], %101 {strides = array<i32>} : memref<64x32xf32, #tpu.memory_space<vmem>>, vector<8x32xf32>,
    %103 = vector.extract_strided_slice %42 {offsets = [24, 0], sizes = [8, 96], strides = [1, 1]} : vector<64x96xf32> to vector<8x96xf32>
    %cst_46 = arith.constant dense<0.000000e+00> : vector<8x96xf32>
    %104 = tpu.matmul %101, %34, %cst_46 {dimension_numbers = #tpu.dot_dimension_numbers<[1], [0], [0], [1], [0, 0, 1, 1], [], []>} : vector<8x32xf32>, vector<32x96xf32>, vector<8x96xf32> -> vector<8x96xf32>
    %105 = vector.extract_strided_slice %103 {offsets = [0, 0], sizes = [8, 64], strides = [1, 1]} : vector<8x96xf32> to vector<8x64xf32>
    %106 = vector.extract_strided_slice %104 {offsets = [0, 0], sizes = [8, 64], strides = [1, 1]} : vector<8x96xf32> to vector<8x64xf32>
    %107 = arith.addf %105, %106 : vector<8x64xf32>
    %108 = arith.negf %107 : vector<8x64xf32>
    %109 = math.exp %108 : vector<8x64xf32>
    %cst_47 = arith.constant 1.000000e+00 : f32
    %110 = vector.broadcast %cst_47 : f32 to vector<8x64xf32>
    %111 = arith.addf %110, %109 : vector<8x64xf32>
    %112 = arith.divf %110, %111 : vector<8x64xf32>
    %113 = vector.extract_strided_slice %112 {offsets = [0, 0], sizes = [8, 32], strides = [1, 1]} : vector<8x64xf32> to vector<8x32xf32>
    %114 = vector.extract_strided_slice %112 {offsets = [0, 32], sizes = [8, 32], strides = [1, 1]} : vector<8x64xf32> to vector<8x32xf32>
    %115 = vector.extract_strided_slice %103 {offsets = [0, 64], sizes = [8, 32], strides = [1, 1]} : vector<8x96xf32> to vector<8x32xf32>
    %116 = vector.extract_strided_slice %104 {offsets = [0, 64], sizes = [8, 32], strides = [1, 1]} : vector<8x96xf32> to vector<8x32xf32>
    %117 = arith.addf %116, %38 : vector<8x32xf32>
    %118 = arith.mulf %113, %117 : vector<8x32xf32>
    %119 = arith.addf %115, %118 : vector<8x32xf32>
    %120 = math.tanh %119 : vector<8x32xf32>
    %121 = arith.subf %101, %120 : vector<8x32xf32>
    %122 = arith.mulf %114, %121 : vector<8x32xf32>
    %123 = arith.addf %120, %122 : vector<8x32xf32>
    %c24_48 = arith.constant 24 : index
    %c0_49 = arith.constant 0 : index
    %124 = vector.load %arg4[%c24_48, %c0_49] : memref<64x32xf32, #tpu.memory_space<vmem>>, vector<8x32xf32>
    tpu.vector_store %arg4[%c24_48, %c0_49], %123 {strides = array<i32>} : memref<64x32xf32, #tpu.memory_space<vmem>>, vector<8x32xf32>,
    %125 = vector.extract_strided_slice %42 {offsets = [32, 0], sizes = [8, 96], strides = [1, 1]} : vector<64x96xf32> to vector<8x96xf32>
    %cst_50 = arith.constant dense<0.000000e+00> : vector<8x96xf32>
    %126 = tpu.matmul %123, %34, %cst_50 {dimension_numbers = #tpu.dot_dimension_numbers<[1], [0], [0], [1], [0, 0, 1, 1], [], []>} : vector<8x32xf32>, vector<32x96xf32>, vector<8x96xf32> -> vector<8x96xf32>
    %127 = vector.extract_strided_slice %125 {offsets = [0, 0], sizes = [8, 64], strides = [1, 1]} : vector<8x96xf32> to vector<8x64xf32>
    %128 = vector.extract_strided_slice %126 {offsets = [0, 0], sizes = [8, 64], strides = [1, 1]} : vector<8x96xf32> to vector<8x64xf32>
    %129 = arith.addf %127, %128 : vector<8x64xf32>
    %130 = arith.negf %129 : vector<8x64xf32>
    %131 = math.exp %130 : vector<8x64xf32>
    %cst_51 = arith.constant 1.000000e+00 : f32
    %132 = vector.broadcast %cst_51 : f32 to vector<8x64xf32>
    %133 = arith.addf %132, %131 : vector<8x64xf32>
    %134 = arith.divf %132, %133 : vector<8x64xf32>
    %135 = vector.extract_strided_slice %134 {offsets = [0, 0], sizes = [8, 32], strides = [1, 1]} : vector<8x64xf32> to vector<8x32xf32>
    %136 = vector.extract_strided_slice %134 {offsets = [0, 32], sizes = [8, 32], strides = [1, 1]} : vector<8x64xf32> to vector<8x32xf32>
    %137 = vector.extract_strided_slice %125 {offsets = [0, 64], sizes = [8, 32], strides = [1, 1]} : vector<8x96xf32> to vector<8x32xf32>
    %138 = vector.extract_strided_slice %126 {offsets = [0, 64], sizes = [8, 32], strides = [1, 1]} : vector<8x96xf32> to vector<8x32xf32>
    %139 = arith.addf %138, %38 : vector<8x32xf32>
    %140 = arith.mulf %135, %139 : vector<8x32xf32>
    %141 = arith.addf %137, %140 : vector<8x32xf32>
    %142 = math.tanh %141 : vector<8x32xf32>
    %143 = arith.subf %123, %142 : vector<8x32xf32>
    %144 = arith.mulf %136, %143 : vector<8x32xf32>
    %145 = arith.addf %142, %144 : vector<8x32xf32>
    %c32_52 = arith.constant 32 : index
    %c0_53 = arith.constant 0 : index
    %146 = vector.load %arg4[%c32_52, %c0_53] : memref<64x32xf32, #tpu.memory_space<vmem>>, vector<8x32xf32>
    tpu.vector_store %arg4[%c32_52, %c0_53], %145 {strides = array<i32>} : memref<64x32xf32, #tpu.memory_space<vmem>>, vector<8x32xf32>,
    %147 = vector.extract_strided_slice %42 {offsets = [40, 0], sizes = [8, 96], strides = [1, 1]} : vector<64x96xf32> to vector<8x96xf32>
    %cst_54 = arith.constant dense<0.000000e+00> : vector<8x96xf32>
    %148 = tpu.matmul %145, %34, %cst_54 {dimension_numbers = #tpu.dot_dimension_numbers<[1], [0], [0], [1], [0, 0, 1, 1], [], []>} : vector<8x32xf32>, vector<32x96xf32>, vector<8x96xf32> -> vector<8x96xf32>
    %149 = vector.extract_strided_slice %147 {offsets = [0, 0], sizes = [8, 64], strides = [1, 1]} : vector<8x96xf32> to vector<8x64xf32>
    %150 = vector.extract_strided_slice %148 {offsets = [0, 0], sizes = [8, 64], strides = [1, 1]} : vector<8x96xf32> to vector<8x64xf32>
    %151 = arith.addf %149, %150 : vector<8x64xf32>
    %152 = arith.negf %151 : vector<8x64xf32>
    %153 = math.exp %152 : vector<8x64xf32>
    %cst_55 = arith.constant 1.000000e+00 : f32
    %154 = vector.broadcast %cst_55 : f32 to vector<8x64xf32>
    %155 = arith.addf %154, %153 : vector<8x64xf32>
    %156 = arith.divf %154, %155 : vector<8x64xf32>
    %157 = vector.extract_strided_slice %156 {offsets = [0, 0], sizes = [8, 32], strides = [1, 1]} : vector<8x64xf32> to vector<8x32xf32>
    %158 = vector.extract_strided_slice %156 {offsets = [0, 32], sizes = [8, 32], strides = [1, 1]} : vector<8x64xf32> to vector<8x32xf32>
    %159 = vector.extract_strided_slice %147 {offsets = [0, 64], sizes = [8, 32], strides = [1, 1]} : vector<8x96xf32> to vector<8x32xf32>
    %160 = vector.extract_strided_slice %148 {offsets = [0, 64], sizes = [8, 32], strides = [1, 1]} : vector<8x96xf32> to vector<8x32xf32>
    %161 = arith.addf %160, %38 : vector<8x32xf32>
    %162 = arith.mulf %157, %161 : vector<8x32xf32>
    %163 = arith.addf %159, %162 : vector<8x32xf32>
    %164 = math.tanh %163 : vector<8x32xf32>
    %165 = arith.subf %145, %164 : vector<8x32xf32>
    %166 = arith.mulf %158, %165 : vector<8x32xf32>
    %167 = arith.addf %164, %166 : vector<8x32xf32>
    %c40_56 = arith.constant 40 : index
    %c0_57 = arith.constant 0 : index
    %168 = vector.load %arg4[%c40_56, %c0_57] : memref<64x32xf32, #tpu.memory_space<vmem>>, vector<8x32xf32>
    tpu.vector_store %arg4[%c40_56, %c0_57], %167 {strides = array<i32>} : memref<64x32xf32, #tpu.memory_space<vmem>>, vector<8x32xf32>,
    %169 = vector.extract_strided_slice %42 {offsets = [48, 0], sizes = [8, 96], strides = [1, 1]} : vector<64x96xf32> to vector<8x96xf32>
    %cst_58 = arith.constant dense<0.000000e+00> : vector<8x96xf32>
    %170 = tpu.matmul %167, %34, %cst_58 {dimension_numbers = #tpu.dot_dimension_numbers<[1], [0], [0], [1], [0, 0, 1, 1], [], []>} : vector<8x32xf32>, vector<32x96xf32>, vector<8x96xf32> -> vector<8x96xf32>
    %171 = vector.extract_strided_slice %169 {offsets = [0, 0], sizes = [8, 64], strides = [1, 1]} : vector<8x96xf32> to vector<8x64xf32>
    %172 = vector.extract_strided_slice %170 {offsets = [0, 0], sizes = [8, 64], strides = [1, 1]} : vector<8x96xf32> to vector<8x64xf32>
    %173 = arith.addf %171, %172 : vector<8x64xf32>
    %174 = arith.negf %173 : vector<8x64xf32>
    %175 = math.exp %174 : vector<8x64xf32>
    %cst_59 = arith.constant 1.000000e+00 : f32
    %176 = vector.broadcast %cst_59 : f32 to vector<8x64xf32>
    %177 = arith.addf %176, %175 : vector<8x64xf32>
    %178 = arith.divf %176, %177 : vector<8x64xf32>
    %179 = vector.extract_strided_slice %178 {offsets = [0, 0], sizes = [8, 32], strides = [1, 1]} : vector<8x64xf32> to vector<8x32xf32>
    %180 = vector.extract_strided_slice %178 {offsets = [0, 32], sizes = [8, 32], strides = [1, 1]} : vector<8x64xf32> to vector<8x32xf32>
    %181 = vector.extract_strided_slice %169 {offsets = [0, 64], sizes = [8, 32], strides = [1, 1]} : vector<8x96xf32> to vector<8x32xf32>
    %182 = vector.extract_strided_slice %170 {offsets = [0, 64], sizes = [8, 32], strides = [1, 1]} : vector<8x96xf32> to vector<8x32xf32>
    %183 = arith.addf %182, %38 : vector<8x32xf32>
    %184 = arith.mulf %179, %183 : vector<8x32xf32>
    %185 = arith.addf %181, %184 : vector<8x32xf32>
    %186 = math.tanh %185 : vector<8x32xf32>
    %187 = arith.subf %167, %186 : vector<8x32xf32>
    %188 = arith.mulf %180, %187 : vector<8x32xf32>
    %189 = arith.addf %186, %188 : vector<8x32xf32>
    %c48_60 = arith.constant 48 : index
    %c0_61 = arith.constant 0 : index
    %190 = vector.load %arg4[%c48_60, %c0_61] : memref<64x32xf32, #tpu.memory_space<vmem>>, vector<8x32xf32>
    tpu.vector_store %arg4[%c48_60, %c0_61], %189 {strides = array<i32>} : memref<64x32xf32, #tpu.memory_space<vmem>>, vector<8x32xf32>,
    %191 = vector.extract_strided_slice %42 {offsets = [56, 0], sizes = [8, 96], strides = [1, 1]} : vector<64x96xf32> to vector<8x96xf32>
    %cst_62 = arith.constant dense<0.000000e+00> : vector<8x96xf32>
    %192 = tpu.matmul %189, %34, %cst_62 {dimension_numbers = #tpu.dot_dimension_numbers<[1], [0], [0], [1], [0, 0, 1, 1], [], []>} : vector<8x32xf32>, vector<32x96xf32>, vector<8x96xf32> -> vector<8x96xf32>
    %193 = vector.extract_strided_slice %191 {offsets = [0, 0], sizes = [8, 64], strides = [1, 1]} : vector<8x96xf32> to vector<8x64xf32>
    %194 = vector.extract_strided_slice %192 {offsets = [0, 0], sizes = [8, 64], strides = [1, 1]} : vector<8x96xf32> to vector<8x64xf32>
    %195 = arith.addf %193, %194 : vector<8x64xf32>
    %196 = arith.negf %195 : vector<8x64xf32>
    %197 = math.exp %196 : vector<8x64xf32>
    %cst_63 = arith.constant 1.000000e+00 : f32
    %198 = vector.broadcast %cst_63 : f32 to vector<8x64xf32>
    %199 = arith.addf %198, %197 : vector<8x64xf32>
    %200 = arith.divf %198, %199 : vector<8x64xf32>
    %201 = vector.extract_strided_slice %200 {offsets = [0, 0], sizes = [8, 32], strides = [1, 1]} : vector<8x64xf32> to vector<8x32xf32>
    %202 = vector.extract_strided_slice %200 {offsets = [0, 32], sizes = [8, 32], strides = [1, 1]} : vector<8x64xf32> to vector<8x32xf32>
    %203 = vector.extract_strided_slice %191 {offsets = [0, 64], sizes = [8, 32], strides = [1, 1]} : vector<8x96xf32> to vector<8x32xf32>
    %204 = vector.extract_strided_slice %192 {offsets = [0, 64], sizes = [8, 32], strides = [1, 1]} : vector<8x96xf32> to vector<8x32xf32>
    %205 = arith.addf %204, %38 : vector<8x32xf32>
    %206 = arith.mulf %201, %205 : vector<8x32xf32>
    %207 = arith.addf %203, %206 : vector<8x32xf32>
    %208 = math.tanh %207 : vector<8x32xf32>
    %209 = arith.subf %189, %208 : vector<8x32xf32>
    %210 = arith.mulf %202, %209 : vector<8x32xf32>
    %211 = arith.addf %208, %210 : vector<8x32xf32>
    %c56_64 = arith.constant 56 : index
    %c0_65 = arith.constant 0 : index
    %212 = vector.load %arg4[%c56_64, %c0_65] : memref<64x32xf32, #tpu.memory_space<vmem>>, vector<8x32xf32>
    tpu.vector_store %arg4[%c56_64, %c0_65], %211 {strides = array<i32>} : memref<64x32xf32, #tpu.memory_space<vmem>>, vector<8x32xf32>,
    %c40_66 = arith.constant 40 : index
    %c0_67 = arith.constant 0 : index
    %213 = vector.load %arg1[%c40_66, %c0_67] : memref<144x128xf32, #tpu.memory_space<vmem>>, vector<32x96xf32>
    %c72 = arith.constant 72 : index
    %c0_68 = arith.constant 0 : index
    %214 = vector.load %arg1[%c72, %c0_68] : memref<144x128xf32, #tpu.memory_space<vmem>>, vector<32x96xf32>
    %c138 = arith.constant 138 : index
    %c0_69 = arith.constant 0 : index
    %215 = vector.load %arg1[%c138, %c0_69] : memref<144x128xf32, #tpu.memory_space<vmem>>, vector<1x96xf32>
    %c139 = arith.constant 139 : index
    %c0_70 = arith.constant 0 : index
    %216 = vector.load %arg1[%c139, %c0_70] : memref<144x128xf32, #tpu.memory_space<vmem>>, vector<1x32xf32>
    %217 = vector.shape_cast %216 : vector<1x32xf32> to vector<1x32xf32>
    %218 = vector.broadcast %217 : vector<1x32xf32> to vector<8x32xf32>
    %c0_71 = arith.constant 0 : index
    %c0_72 = arith.constant 0 : index
    %219 = vector.load %arg4[%c0_71, %c0_72] : memref<64x32xf32, #tpu.memory_space<vmem>>, vector<64x32xf32>
    %cst_73 = arith.constant dense<0.000000e+00> : vector<64x96xf32>
    %220 = tpu.matmul %219, %213, %cst_73 {dimension_numbers = #tpu.dot_dimension_numbers<[1], [0], [0], [1], [0, 0, 1, 1], [], []>} : vector<64x32xf32>, vector<32x96xf32>, vector<64x96xf32> -> vector<64x96xf32>
    %221 = vector.broadcast %215 : vector<1x96xf32> to vector<64x96xf32>
    %222 = arith.addf %220, %221 : vector<64x96xf32>
    %223 = vector.extract_strided_slice %222 {offsets = [0, 0], sizes = [8, 96], strides = [1, 1]} : vector<64x96xf32> to vector<8x96xf32>
    %224 = vector.extract_strided_slice %223 {offsets = [0, 0], sizes = [8, 64], strides = [1, 1]} : vector<8x96xf32> to vector<8x64xf32>
    %225 = arith.negf %224 : vector<8x64xf32>
    %226 = math.exp %225 : vector<8x64xf32>
    %cst_74 = arith.constant 1.000000e+00 : f32
    %227 = vector.broadcast %cst_74 : f32 to vector<8x64xf32>
    %228 = arith.addf %227, %226 : vector<8x64xf32>
    %229 = arith.divf %227, %228 : vector<8x64xf32>
    %230 = vector.extract_strided_slice %229 {offsets = [0, 0], sizes = [8, 32], strides = [1, 1]} : vector<8x64xf32> to vector<8x32xf32>
    %231 = vector.extract_strided_slice %229 {offsets = [0, 32], sizes = [8, 32], strides = [1, 1]} : vector<8x64xf32> to vector<8x32xf32>
    %232 = vector.extract_strided_slice %223 {offsets = [0, 64], sizes = [8, 32], strides = [1, 1]} : vector<8x96xf32> to vector<8x32xf32>
    %233 = arith.mulf %230, %218 : vector<8x32xf32>
    %234 = arith.addf %232, %233 : vector<8x32xf32>
    %235 = math.tanh %234 : vector<8x32xf32>
    %236 = arith.mulf %231, %235 : vector<8x32xf32>
    %237 = arith.subf %235, %236 : vector<8x32xf32>
    %c0_75 = arith.constant 0 : index
    %c0_76 = arith.constant 0 : index
    %238 = vector.load %arg3[%c0_75, %c0_76] : memref<64x32xf32, #tpu.memory_space<vmem>>, vector<8x32xf32>
    tpu.vector_store %arg3[%c0_75, %c0_76], %237 {strides = array<i32>} : memref<64x32xf32, #tpu.memory_space<vmem>>, vector<8x32xf32>,
    %239 = vector.extract_strided_slice %222 {offsets = [8, 0], sizes = [8, 96], strides = [1, 1]} : vector<64x96xf32> to vector<8x96xf32>
    %cst_77 = arith.constant dense<0.000000e+00> : vector<8x96xf32>
    %240 = tpu.matmul %237, %214, %cst_77 {dimension_numbers = #tpu.dot_dimension_numbers<[1], [0], [0], [1], [0, 0, 1, 1], [], []>} : vector<8x32xf32>, vector<32x96xf32>, vector<8x96xf32> -> vector<8x96xf32>
    %241 = vector.extract_strided_slice %239 {offsets = [0, 0], sizes = [8, 64], strides = [1, 1]} : vector<8x96xf32> to vector<8x64xf32>
    %242 = vector.extract_strided_slice %240 {offsets = [0, 0], sizes = [8, 64], strides = [1, 1]} : vector<8x96xf32> to vector<8x64xf32>
    %243 = arith.addf %241, %242 : vector<8x64xf32>
    %244 = arith.negf %243 : vector<8x64xf32>
    %245 = math.exp %244 : vector<8x64xf32>
    %cst_78 = arith.constant 1.000000e+00 : f32
    %246 = vector.broadcast %cst_78 : f32 to vector<8x64xf32>
    %247 = arith.addf %246, %245 : vector<8x64xf32>
    %248 = arith.divf %246, %247 : vector<8x64xf32>
    %249 = vector.extract_strided_slice %248 {offsets = [0, 0], sizes = [8, 32], strides = [1, 1]} : vector<8x64xf32> to vector<8x32xf32>
    %250 = vector.extract_strided_slice %248 {offsets = [0, 32], sizes = [8, 32], strides = [1, 1]} : vector<8x64xf32> to vector<8x32xf32>
    %251 = vector.extract_strided_slice %239 {offsets = [0, 64], sizes = [8, 32], strides = [1, 1]} : vector<8x96xf32> to vector<8x32xf32>
    %252 = vector.extract_strided_slice %240 {offsets = [0, 64], sizes = [8, 32], strides = [1, 1]} : vector<8x96xf32> to vector<8x32xf32>
    %253 = arith.addf %252, %218 : vector<8x32xf32>
    %254 = arith.mulf %249, %253 : vector<8x32xf32>
    %255 = arith.addf %251, %254 : vector<8x32xf32>
    %256 = math.tanh %255 : vector<8x32xf32>
    %257 = arith.subf %237, %256 : vector<8x32xf32>
    %258 = arith.mulf %250, %257 : vector<8x32xf32>
    %259 = arith.addf %256, %258 : vector<8x32xf32>
    %c8_79 = arith.constant 8 : index
    %c0_80 = arith.constant 0 : index
    %260 = vector.load %arg3[%c8_79, %c0_80] : memref<64x32xf32, #tpu.memory_space<vmem>>, vector<8x32xf32>
    tpu.vector_store %arg3[%c8_79, %c0_80], %259 {strides = array<i32>} : memref<64x32xf32, #tpu.memory_space<vmem>>, vector<8x32xf32>,
    %261 = vector.extract_strided_slice %222 {offsets = [16, 0], sizes = [8, 96], strides = [1, 1]} : vector<64x96xf32> to vector<8x96xf32>
    %cst_81 = arith.constant dense<0.000000e+00> : vector<8x96xf32>
    %262 = tpu.matmul %259, %214, %cst_81 {dimension_numbers = #tpu.dot_dimension_numbers<[1], [0], [0], [1], [0, 0, 1, 1], [], []>} : vector<8x32xf32>, vector<32x96xf32>, vector<8x96xf32> -> vector<8x96xf32>
    %263 = vector.extract_strided_slice %261 {offsets = [0, 0], sizes = [8, 64], strides = [1, 1]} : vector<8x96xf32> to vector<8x64xf32>
    %264 = vector.extract_strided_slice %262 {offsets = [0, 0], sizes = [8, 64], strides = [1, 1]} : vector<8x96xf32> to vector<8x64xf32>
    %265 = arith.addf %263, %264 : vector<8x64xf32>
    %266 = arith.negf %265 : vector<8x64xf32>
    %267 = math.exp %266 : vector<8x64xf32>
    %cst_82 = arith.constant 1.000000e+00 : f32
    %268 = vector.broadcast %cst_82 : f32 to vector<8x64xf32>
    %269 = arith.addf %268, %267 : vector<8x64xf32>
    %270 = arith.divf %268, %269 : vector<8x64xf32>
    %271 = vector.extract_strided_slice %270 {offsets = [0, 0], sizes = [8, 32], strides = [1, 1]} : vector<8x64xf32> to vector<8x32xf32>
    %272 = vector.extract_strided_slice %270 {offsets = [0, 32], sizes = [8, 32], strides = [1, 1]} : vector<8x64xf32> to vector<8x32xf32>
    %273 = vector.extract_strided_slice %261 {offsets = [0, 64], sizes = [8, 32], strides = [1, 1]} : vector<8x96xf32> to vector<8x32xf32>
    %274 = vector.extract_strided_slice %262 {offsets = [0, 64], sizes = [8, 32], strides = [1, 1]} : vector<8x96xf32> to vector<8x32xf32>
    %275 = arith.addf %274, %218 : vector<8x32xf32>
    %276 = arith.mulf %271, %275 : vector<8x32xf32>
    %277 = arith.addf %273, %276 : vector<8x32xf32>
    %278 = math.tanh %277 : vector<8x32xf32>
    %279 = arith.subf %259, %278 : vector<8x32xf32>
    %280 = arith.mulf %272, %279 : vector<8x32xf32>
    %281 = arith.addf %278, %280 : vector<8x32xf32>
    %c16_83 = arith.constant 16 : index
    %c0_84 = arith.constant 0 : index
    %282 = vector.load %arg3[%c16_83, %c0_84] : memref<64x32xf32, #tpu.memory_space<vmem>>, vector<8x32xf32>
    tpu.vector_store %arg3[%c16_83, %c0_84], %281 {strides = array<i32>} : memref<64x32xf32, #tpu.memory_space<vmem>>, vector<8x32xf32>,
    %283 = vector.extract_strided_slice %222 {offsets = [24, 0], sizes = [8, 96], strides = [1, 1]} : vector<64x96xf32> to vector<8x96xf32>
    %cst_85 = arith.constant dense<0.000000e+00> : vector<8x96xf32>
    %284 = tpu.matmul %281, %214, %cst_85 {dimension_numbers = #tpu.dot_dimension_numbers<[1], [0], [0], [1], [0, 0, 1, 1], [], []>} : vector<8x32xf32>, vector<32x96xf32>, vector<8x96xf32> -> vector<8x96xf32>
    %285 = vector.extract_strided_slice %283 {offsets = [0, 0], sizes = [8, 64], strides = [1, 1]} : vector<8x96xf32> to vector<8x64xf32>
    %286 = vector.extract_strided_slice %284 {offsets = [0, 0], sizes = [8, 64], strides = [1, 1]} : vector<8x96xf32> to vector<8x64xf32>
    %287 = arith.addf %285, %286 : vector<8x64xf32>
    %288 = arith.negf %287 : vector<8x64xf32>
    %289 = math.exp %288 : vector<8x64xf32>
    %cst_86 = arith.constant 1.000000e+00 : f32
    %290 = vector.broadcast %cst_86 : f32 to vector<8x64xf32>
    %291 = arith.addf %290, %289 : vector<8x64xf32>
    %292 = arith.divf %290, %291 : vector<8x64xf32>
    %293 = vector.extract_strided_slice %292 {offsets = [0, 0], sizes = [8, 32], strides = [1, 1]} : vector<8x64xf32> to vector<8x32xf32>
    %294 = vector.extract_strided_slice %292 {offsets = [0, 32], sizes = [8, 32], strides = [1, 1]} : vector<8x64xf32> to vector<8x32xf32>
    %295 = vector.extract_strided_slice %283 {offsets = [0, 64], sizes = [8, 32], strides = [1, 1]} : vector<8x96xf32> to vector<8x32xf32>
    %296 = vector.extract_strided_slice %284 {offsets = [0, 64], sizes = [8, 32], strides = [1, 1]} : vector<8x96xf32> to vector<8x32xf32>
    %297 = arith.addf %296, %218 : vector<8x32xf32>
    %298 = arith.mulf %293, %297 : vector<8x32xf32>
    %299 = arith.addf %295, %298 : vector<8x32xf32>
    %300 = math.tanh %299 : vector<8x32xf32>
    %301 = arith.subf %281, %300 : vector<8x32xf32>
    %302 = arith.mulf %294, %301 : vector<8x32xf32>
    %303 = arith.addf %300, %302 : vector<8x32xf32>
    %c24_87 = arith.constant 24 : index
    %c0_88 = arith.constant 0 : index
    %304 = vector.load %arg3[%c24_87, %c0_88] : memref<64x32xf32, #tpu.memory_space<vmem>>, vector<8x32xf32>
    tpu.vector_store %arg3[%c24_87, %c0_88], %303 {strides = array<i32>} : memref<64x32xf32, #tpu.memory_space<vmem>>, vector<8x32xf32>,
    %305 = vector.extract_strided_slice %222 {offsets = [32, 0], sizes = [8, 96], strides = [1, 1]} : vector<64x96xf32> to vector<8x96xf32>
    %cst_89 = arith.constant dense<0.000000e+00> : vector<8x96xf32>
    %306 = tpu.matmul %303, %214, %cst_89 {dimension_numbers = #tpu.dot_dimension_numbers<[1], [0], [0], [1], [0, 0, 1, 1], [], []>} : vector<8x32xf32>, vector<32x96xf32>, vector<8x96xf32> -> vector<8x96xf32>
    %307 = vector.extract_strided_slice %305 {offsets = [0, 0], sizes = [8, 64], strides = [1, 1]} : vector<8x96xf32> to vector<8x64xf32>
    %308 = vector.extract_strided_slice %306 {offsets = [0, 0], sizes = [8, 64], strides = [1, 1]} : vector<8x96xf32> to vector<8x64xf32>
    %309 = arith.addf %307, %308 : vector<8x64xf32>
    %310 = arith.negf %309 : vector<8x64xf32>
    %311 = math.exp %310 : vector<8x64xf32>
    %cst_90 = arith.constant 1.000000e+00 : f32
    %312 = vector.broadcast %cst_90 : f32 to vector<8x64xf32>
    %313 = arith.addf %312, %311 : vector<8x64xf32>
    %314 = arith.divf %312, %313 : vector<8x64xf32>
    %315 = vector.extract_strided_slice %314 {offsets = [0, 0], sizes = [8, 32], strides = [1, 1]} : vector<8x64xf32> to vector<8x32xf32>
    %316 = vector.extract_strided_slice %314 {offsets = [0, 32], sizes = [8, 32], strides = [1, 1]} : vector<8x64xf32> to vector<8x32xf32>
    %317 = vector.extract_strided_slice %305 {offsets = [0, 64], sizes = [8, 32], strides = [1, 1]} : vector<8x96xf32> to vector<8x32xf32>
    %318 = vector.extract_strided_slice %306 {offsets = [0, 64], sizes = [8, 32], strides = [1, 1]} : vector<8x96xf32> to vector<8x32xf32>
    %319 = arith.addf %318, %218 : vector<8x32xf32>
    %320 = arith.mulf %315, %319 : vector<8x32xf32>
    %321 = arith.addf %317, %320 : vector<8x32xf32>
    %322 = math.tanh %321 : vector<8x32xf32>
    %323 = arith.subf %303, %322 : vector<8x32xf32>
    %324 = arith.mulf %316, %323 : vector<8x32xf32>
    %325 = arith.addf %322, %324 : vector<8x32xf32>
    %c32_91 = arith.constant 32 : index
    %c0_92 = arith.constant 0 : index
    %326 = vector.load %arg3[%c32_91, %c0_92] : memref<64x32xf32, #tpu.memory_space<vmem>>, vector<8x32xf32>
    tpu.vector_store %arg3[%c32_91, %c0_92], %325 {strides = array<i32>} : memref<64x32xf32, #tpu.memory_space<vmem>>, vector<8x32xf32>,
    %327 = vector.extract_strided_slice %222 {offsets = [40, 0], sizes = [8, 96], strides = [1, 1]} : vector<64x96xf32> to vector<8x96xf32>
    %cst_93 = arith.constant dense<0.000000e+00> : vector<8x96xf32>
    %328 = tpu.matmul %325, %214, %cst_93 {dimension_numbers = #tpu.dot_dimension_numbers<[1], [0], [0], [1], [0, 0, 1, 1], [], []>} : vector<8x32xf32>, vector<32x96xf32>, vector<8x96xf32> -> vector<8x96xf32>
    %329 = vector.extract_strided_slice %327 {offsets = [0, 0], sizes = [8, 64], strides = [1, 1]} : vector<8x96xf32> to vector<8x64xf32>
    %330 = vector.extract_strided_slice %328 {offsets = [0, 0], sizes = [8, 64], strides = [1, 1]} : vector<8x96xf32> to vector<8x64xf32>
    %331 = arith.addf %329, %330 : vector<8x64xf32>
    %332 = arith.negf %331 : vector<8x64xf32>
    %333 = math.exp %332 : vector<8x64xf32>
    %cst_94 = arith.constant 1.000000e+00 : f32
    %334 = vector.broadcast %cst_94 : f32 to vector<8x64xf32>
    %335 = arith.addf %334, %333 : vector<8x64xf32>
    %336 = arith.divf %334, %335 : vector<8x64xf32>
    %337 = vector.extract_strided_slice %336 {offsets = [0, 0], sizes = [8, 32], strides = [1, 1]} : vector<8x64xf32> to vector<8x32xf32>
    %338 = vector.extract_strided_slice %336 {offsets = [0, 32], sizes = [8, 32], strides = [1, 1]} : vector<8x64xf32> to vector<8x32xf32>
    %339 = vector.extract_strided_slice %327 {offsets = [0, 64], sizes = [8, 32], strides = [1, 1]} : vector<8x96xf32> to vector<8x32xf32>
    %340 = vector.extract_strided_slice %328 {offsets = [0, 64], sizes = [8, 32], strides = [1, 1]} : vector<8x96xf32> to vector<8x32xf32>
    %341 = arith.addf %340, %218 : vector<8x32xf32>
    %342 = arith.mulf %337, %341 : vector<8x32xf32>
    %343 = arith.addf %339, %342 : vector<8x32xf32>
    %344 = math.tanh %343 : vector<8x32xf32>
    %345 = arith.subf %325, %344 : vector<8x32xf32>
    %346 = arith.mulf %338, %345 : vector<8x32xf32>
    %347 = arith.addf %344, %346 : vector<8x32xf32>
    %c40_95 = arith.constant 40 : index
    %c0_96 = arith.constant 0 : index
    %348 = vector.load %arg3[%c40_95, %c0_96] : memref<64x32xf32, #tpu.memory_space<vmem>>, vector<8x32xf32>
    tpu.vector_store %arg3[%c40_95, %c0_96], %347 {strides = array<i32>} : memref<64x32xf32, #tpu.memory_space<vmem>>, vector<8x32xf32>,
    %349 = vector.extract_strided_slice %222 {offsets = [48, 0], sizes = [8, 96], strides = [1, 1]} : vector<64x96xf32> to vector<8x96xf32>
    %cst_97 = arith.constant dense<0.000000e+00> : vector<8x96xf32>
    %350 = tpu.matmul %347, %214, %cst_97 {dimension_numbers = #tpu.dot_dimension_numbers<[1], [0], [0], [1], [0, 0, 1, 1], [], []>} : vector<8x32xf32>, vector<32x96xf32>, vector<8x96xf32> -> vector<8x96xf32>
    %351 = vector.extract_strided_slice %349 {offsets = [0, 0], sizes = [8, 64], strides = [1, 1]} : vector<8x96xf32> to vector<8x64xf32>
    %352 = vector.extract_strided_slice %350 {offsets = [0, 0], sizes = [8, 64], strides = [1, 1]} : vector<8x96xf32> to vector<8x64xf32>
    %353 = arith.addf %351, %352 : vector<8x64xf32>
    %354 = arith.negf %353 : vector<8x64xf32>
    %355 = math.exp %354 : vector<8x64xf32>
    %cst_98 = arith.constant 1.000000e+00 : f32
    %356 = vector.broadcast %cst_98 : f32 to vector<8x64xf32>
    %357 = arith.addf %356, %355 : vector<8x64xf32>
    %358 = arith.divf %356, %357 : vector<8x64xf32>
    %359 = vector.extract_strided_slice %358 {offsets = [0, 0], sizes = [8, 32], strides = [1, 1]} : vector<8x64xf32> to vector<8x32xf32>
    %360 = vector.extract_strided_slice %358 {offsets = [0, 32], sizes = [8, 32], strides = [1, 1]} : vector<8x64xf32> to vector<8x32xf32>
    %361 = vector.extract_strided_slice %349 {offsets = [0, 64], sizes = [8, 32], strides = [1, 1]} : vector<8x96xf32> to vector<8x32xf32>
    %362 = vector.extract_strided_slice %350 {offsets = [0, 64], sizes = [8, 32], strides = [1, 1]} : vector<8x96xf32> to vector<8x32xf32>
    %363 = arith.addf %362, %218 : vector<8x32xf32>
    %364 = arith.mulf %359, %363 : vector<8x32xf32>
    %365 = arith.addf %361, %364 : vector<8x32xf32>
    %366 = math.tanh %365 : vector<8x32xf32>
    %367 = arith.subf %347, %366 : vector<8x32xf32>
    %368 = arith.mulf %360, %367 : vector<8x32xf32>
    %369 = arith.addf %366, %368 : vector<8x32xf32>
    %c48_99 = arith.constant 48 : index
    %c0_100 = arith.constant 0 : index
    %370 = vector.load %arg3[%c48_99, %c0_100] : memref<64x32xf32, #tpu.memory_space<vmem>>, vector<8x32xf32>
    tpu.vector_store %arg3[%c48_99, %c0_100], %369 {strides = array<i32>} : memref<64x32xf32, #tpu.memory_space<vmem>>, vector<8x32xf32>,
    %371 = vector.extract_strided_slice %222 {offsets = [56, 0], sizes = [8, 96], strides = [1, 1]} : vector<64x96xf32> to vector<8x96xf32>
    %cst_101 = arith.constant dense<0.000000e+00> : vector<8x96xf32>
    %372 = tpu.matmul %369, %214, %cst_101 {dimension_numbers = #tpu.dot_dimension_numbers<[1], [0], [0], [1], [0, 0, 1, 1], [], []>} : vector<8x32xf32>, vector<32x96xf32>, vector<8x96xf32> -> vector<8x96xf32>
    %373 = vector.extract_strided_slice %371 {offsets = [0, 0], sizes = [8, 64], strides = [1, 1]} : vector<8x96xf32> to vector<8x64xf32>
    %374 = vector.extract_strided_slice %372 {offsets = [0, 0], sizes = [8, 64], strides = [1, 1]} : vector<8x96xf32> to vector<8x64xf32>
    %375 = arith.addf %373, %374 : vector<8x64xf32>
    %376 = arith.negf %375 : vector<8x64xf32>
    %377 = math.exp %376 : vector<8x64xf32>
    %cst_102 = arith.constant 1.000000e+00 : f32
    %378 = vector.broadcast %cst_102 : f32 to vector<8x64xf32>
    %379 = arith.addf %378, %377 : vector<8x64xf32>
    %380 = arith.divf %378, %379 : vector<8x64xf32>
    %381 = vector.extract_strided_slice %380 {offsets = [0, 0], sizes = [8, 32], strides = [1, 1]} : vector<8x64xf32> to vector<8x32xf32>
    %382 = vector.extract_strided_slice %380 {offsets = [0, 32], sizes = [8, 32], strides = [1, 1]} : vector<8x64xf32> to vector<8x32xf32>
    %383 = vector.extract_strided_slice %371 {offsets = [0, 64], sizes = [8, 32], strides = [1, 1]} : vector<8x96xf32> to vector<8x32xf32>
    %384 = vector.extract_strided_slice %372 {offsets = [0, 64], sizes = [8, 32], strides = [1, 1]} : vector<8x96xf32> to vector<8x32xf32>
    %385 = arith.addf %384, %218 : vector<8x32xf32>
    %386 = arith.mulf %381, %385 : vector<8x32xf32>
    %387 = arith.addf %383, %386 : vector<8x32xf32>
    %388 = math.tanh %387 : vector<8x32xf32>
    %389 = arith.subf %369, %388 : vector<8x32xf32>
    %390 = arith.mulf %382, %389 : vector<8x32xf32>
    %391 = arith.addf %388, %390 : vector<8x32xf32>
    %c56_103 = arith.constant 56 : index
    %c0_104 = arith.constant 0 : index
    %392 = vector.load %arg3[%c56_103, %c0_104] : memref<64x32xf32, #tpu.memory_space<vmem>>, vector<8x32xf32>
    tpu.vector_store %arg3[%c56_103, %c0_104], %391 {strides = array<i32>} : memref<64x32xf32, #tpu.memory_space<vmem>>, vector<8x32xf32>,
    %c104 = arith.constant 104 : index
    %c0_105 = arith.constant 0 : index
    %393 = vector.load %arg1[%c104, %c0_105] : memref<144x128xf32, #tpu.memory_space<vmem>>, vector<32x128xf32>
    %c140 = arith.constant 140 : index
    %c0_106 = arith.constant 0 : index
    %394 = vector.load %arg1[%c140, %c0_106] : memref<144x128xf32, #tpu.memory_space<vmem>>, vector<1x128xf32>
    %c141 = arith.constant 141 : index
    %c0_107 = arith.constant 0 : index
    %395 = vector.load %arg1[%c141, %c0_107] : memref<144x128xf32, #tpu.memory_space<vmem>>, vector<1x128xf32>
    %c142 = arith.constant 142 : index
    %c0_108 = arith.constant 0 : index
    %396 = vector.load %arg1[%c142, %c0_108] : memref<144x128xf32, #tpu.memory_space<vmem>>, vector<1x128xf32>
    %c0_109 = arith.constant 0 : index
    %c0_110 = arith.constant 0 : index
    %397 = vector.load %arg3[%c0_109, %c0_110] : memref<64x32xf32, #tpu.memory_space<vmem>>, vector<64x32xf32>
    %cst_111 = arith.constant dense<0.000000e+00> : vector<64x128xf32>
    %398 = tpu.matmul %397, %393, %cst_111 {dimension_numbers = #tpu.dot_dimension_numbers<[1], [0], [0], [1], [0, 0, 1, 1], [], []>} : vector<64x32xf32>, vector<32x128xf32>, vector<64x128xf32> -> vector<64x128xf32>
    %399 = vector.broadcast %394 : vector<1x128xf32> to vector<64x128xf32>
    %400 = arith.addf %398, %399 : vector<64x128xf32>
    %401 = math.tanh %400 : vector<64x128xf32>
    %402 = vector.broadcast %395 : vector<1x128xf32> to vector<64x128xf32>
    %403 = arith.mulf %402, %401 : vector<64x128xf32>
    %404 = vector.broadcast %396 : vector<1x128xf32> to vector<64x128xf32>
    %405 = arith.addf %403, %404 : vector<64x128xf32>
    %c0_112 = arith.constant 0 : index
    %c0_113 = arith.constant 0 : index
    %406 = vector.load %arg2[%c0_112, %c0_113] : memref<64x128xf32, #tpu.memory_space<vmem>>, vector<64x128xf32>
    tpu.vector_store %arg2[%c0_112, %c0_113], %405 {strides = array<i32>} : memref<64x128xf32, #tpu.memory_space<vmem>>, vector<64x128xf32>,
    return
  }
}

</mosaic_0001>

<bundles_post_ra>
// kernel: forward_all_policy.1
= control target key start
LH: loop header
LB: loop body
LE: loop exit
PB: predicated region body
PF: predicated region fallthrough
CT: control target
= control target key end

     0   :  { %7 = vsyncpa [#allocation5], 0  ;;  %s2776_s9 = smov [#allocation4]   ;;  %s3228_s0 = inlined_call_operand.vmem [shape: f32[8,28], index: 0, kind: input, shape index: {}]   ;;  %s3229_s1 = inlined_call_operand.hbm [shape: f32[144,128], index: 1, kind: input, shape index: {}]   ;;  %s3230_s2 = inlined_call_operand.vmem [shape: f32[64,128], index: 2, kind: output, shape index: {}]  }
   0x1   :  { %s15_s10 = sshll.u32 %s2776_s9, 4  ;;  %s2752_s13 = scalar_lea.hbm %s3229_s1, 2304  ;;  %s16_s10 = int_to_ptr.vmem [resolvable:$true] %s15_s10 }
   0x2   :  { %p2753_p0 = scmp.ne.s32.totalorder %s3229_s1, %s2752_s13  ;;  %p2756_p1 = scmp.lt.u32.totalorder %s2752_s13, %s3229_s1 }
   0x4   :  { %p2758_p2 = pnand %p2756_p1, %p2753_p0 }
   0x6   :  { %2761 = shalt.err (!%p2758_p2)
}
   0x7   :  { %s2762_s18 = scalar_lea.vmem %s16_s10, 2304  ;;  %p2767_p4 = scmp.lt.s32.totalorder %s16_s10, %s16_s10 }
   0x8   :  { %p2763_p3 = scmp.ne.s32.totalorder %s16_s10, %s2762_s18  ;;  %p2768_p5 = scmp.lt.s32.totalorder %s2762_s18, %s2762_s18 }
   0xa   :  { %p2769_p6 = por %p2768_p5, %p2767_p4 }
   0xc   :  { %p2770_p7 = pnand %p2769_p6, %p2763_p3 }
   0xe   :  { %2773 = shalt.err (!%p2770_p7)
}
   0xf   :  { %s2777_s19 = smov 128   ;;  %s2778_s20 = smov 8  }
  0x10   :  { %21 = dma.hbm_to_vmem [thread:$0]  %s3229_s1, 2304, %s16_s10, [#allocation5], %s2777_s19, %s2777_s19, %s2778_s20  }
  0x11   :  { %2774 = dma.done.wait [#allocation5], 2304  }
  0x12   :  { %2775 = vsyncadd [#allocation5], 4294964992  ;;  %vm27_vm0 = vcmask 56320   ;;  %vm29_vm1 = vcmask 64512   ;;  %v2822_v0 = vld [vmem:[%s3228_s0] sm:$0xff]  ;;  %s2779_s25 = smov 125  }
  0x13   :  { %v87_v1 = vld [vmem:[#allocation4] sm:$0xff]  ;;  %33 = vrot.lane.b32.xlu0 %v2822_v0, %s2779_s25  ;;  %v28_v2 = vsel %vm27_vm0, %v2822_v0, 0.0  ;;  %vm26_vm2 = vcmask 31744   ;;  %v2834_v8 = vld [vmem:[#allocation4 + $0x88] ss:$0 sm:$0xff]  ;;  %s2780_s0 = smov 64  }
  0x14   :  { %2314 = vmatprep.subr.mxu0 %v87_v1  ;;  %30 = vst.msk [vmem:[#allocation2] sm:$0xff] %vm29_vm1, %v28_v2  ;;  %2622 = vmatprep.subr.mxu1 %v87_v1  ;;  %v2150_v15 = vld [vmem:[#allocation4 + $0x89] ss:$0 sm:$0xff]  ;;  %s2781_s1 = smov 116   ;;  %s2782_s26 = smov 110   ;;  %v89_v31 = vld [vmem:[#allocation4 + $0x10] sm:$0xff] }
  0x15   :  { %2315 = vmatpush3.msra.mxu0 %v87_v1  ;;  %2623 = vmatpush3.msra.mxu1 %v87_v1  ;;  %s2783_s27 = smov 96   ;;  %s2784_s28 = smov 32   ;;  %v88_v30 = vld [vmem:[#allocation4 + $0x8] sm:$0xff]  ;;  %v2785_v32 = vmov 0.0|0.0   ;;  %v90_v34 = vld [vmem:[#allocation4 + $0x18] sm:$0xff]  ;;  %v91_v35 = vld [vmem:[#allocation4 + $0x20] sm:$0xff] }
  0x16   :  { %2522 = vmatprep.subr.bf16.mxu1 %v2785_v32  ;;  %v2854_v33 = vpack.c.bf16 %v89_v31, %v88_v30  ;;  %2534 = vmatprep.subr.bf16.mxu0 %v2785_v32  ;;  %s2786_s29 = smov 113   ;;  %v2860_v36 = vpack.c.bf16 %v91_v35, %v90_v34  ;;  %s2787_s30 = smov 107   ;;  %vm2788_vm3 = vmmov 0   ;;  %v2789_v48 = vmov 0.0  }
  0x17   :  { %vm266_vm4 = vcmask 261120   ;;  %s2790_s3 = smov 122   ;;  %s2791_s4 = smov 119  }
  0x1b   :  { %v98_v3 = vld [vmem:[#allocation2] sm:$0xff] }
  0x1c   :  { %2316 = vmatprep.mubr.msk.f32.mxu0 %vm29_vm1, %v98_v3 }
  0x85   :  { %v34_v4 = vpop.permute.xlu0 %33 }
  0x86   :  { %v36_v5 = vsel %vm26_vm2, %v2822_v0, %v34_v4 }
  0x87   :  { %v37_v6 = vsel %vm27_vm0, %v36_v5, 0.0 }
  0x88   :  { %38 = vst.msk [vmem:[#allocation2 + $0x8] sm:$0xff] %vm29_vm1, %v37_v6 }
  0x8f   :  { %v99_v7 = vld [vmem:[#allocation2 + $0x8] sm:$0xff] }
  0x90   :  { %2317 = vmatmul.mubr.msk.f32.vlgmr.msra.gmra.mrb[0].mxu0 %vm29_vm1, %v99_v7 }
  0x91   :  { %2536 = vmatpush3.bf16.msra.mxu0 %v2854_v33 }
  0x92   :  { %2537 = vmatprep.subr.bf16.mxu0 %v2785_v32 }
  0x95   :  { %2539 = vmatpush3.bf16.msra.mxu0 %v2860_v36 }
  0x96   :  { %2546 = vmatprep.subr.bf16.mxu0 %v2785_v32 }
 0x163   :  { %v2836_v9 = vpop.f32.mrb[0].mxu0 }
 0x164   :  { %v200_v10 = vpop.f32.mrb[1].mxu0  ;;  %v206_v58 = vadd.f32 %v2836_v9, %v2834_v8 }
 0x165   :  { %v201_v11 = vadd.f32 %v2834_v8, %v200_v10 }
 0x167   :  { %v2160_v12 = vmul.f32 -1.442695, %v201_v11 }
 0x169   :  { %2640 = vpow2.f32 %v2160_v12 }
 0x173   :  { %v2641_v13 = vpop.eup %2640 }
 0x174   :  { %v242_v14 = vadd.f32 1.0, %v2641_v13 }
 0x176   :  { %2642 = vrcp.f32 %v242_v14 }
 0x180   :  { %v2643_v16 = vpop.eup %2642 }
 0x181   :  { %v245_v17 = vmul.f32 %v2643_v16, %v2150_v15 }
 0x183   :  { %247 = vrot.lane.b32.xlu0 %v245_v17, %s2780_s0 }
 0x187   :  { %57 = vrot.lane.b32.xlu0 %v2822_v0, %s2781_s1 }
 0x18b   :  { %73 = vrot.lane.b32.xlu0 %v2822_v0, %s2782_s26 }
 0x1f5   :  { %v248_v18 = vpop.permute.xlu0 %247 }
 0x1f6   :  { %v250_v19 = vadd.f32 %v248_v18, %v201_v11 }
 0x1f8   :  { %2644 = vtanh.f32 %v250_v19 }
 0x1f9   :  { %v58_v21 = vpop.permute.xlu0 %57 }
 0x1fa   :  { %v60_v22 = vsel %vm26_vm2, %v2822_v0, %v58_v21 }
 0x1fb   :  { %v61_v23 = vsel %vm27_vm0, %v60_v22, 0.0 }
 0x1fc   :  { %62 = vst.msk [vmem:[#allocation2 + $0x20] sm:$0xff] %vm29_vm1, %v61_v23 }
 0x1fd   :  { %v74_v24 = vpop.permute.xlu0 %73 }
 0x1fe   :  { %v76_v25 = vsel %vm26_vm2, %v2822_v0, %v74_v24 }
 0x1ff   :  { %v77_v26 = vsel %vm27_vm0, %v76_v25, 0.0 }
 0x200   :  { %78 = vst.msk [vmem:[#allocation2 + $0x30] sm:$0xff] %vm29_vm1, %v77_v26 }
 0x202   :  { %v2645_v20 = vpop.eup %2644 }
 0x203   :  { %253 = vrot.lane.b32.xlu1 %v2645_v20, %s2783_s27  ;;  %v102_v29 = vld [vmem:[#allocation2 + $0x20] sm:$0xff] }
 0x204   :  { %2322 = vmatprep.mubr.msk.f32.mxu1 %vm29_vm1, %v102_v29 }
 0x207   :  { %v104_v45 = vld [vmem:[#allocation2 + $0x30] sm:$0xff] }
 0x275   :  { %v254_v27 = vpop.permute.xlu1 %253 }
 0x276   :  { %v256_v28 = vmul.f32 %v2643_v16, %v254_v27 }
 0x278   :  { %258 = vrot.lane.b32.xlu1 %v256_v28, %s2784_s28 }
 0x27c   :  { %65 = vrot.lane.b32.xlu1 %v2822_v0, %s2786_s29 }
 0x280   :  { %81 = vrot.lane.b32.xlu1 %v2822_v0, %s2787_s30 }
 0x284   :  { %348 = vrot.lane.b32.xlu1 %v2150_v15, %s2780_s0 }
 0x2ea   :  { %v259_v37 = vpop.permute.xlu1 %258 }
 0x2eb   :  { %v261_v38 = vsub.f32 %v2645_v20, %v259_v37 }
 0x2ed   :  { %263 = vrot.lane.b32.xlu0 %v261_v38, %s2780_s0 }
 0x2ee   :  { %v66_v39 = vpop.permute.xlu1 %65 }
 0x2ef   :  { %v68_v40 = vsel %vm26_vm2, %v2822_v0, %v66_v39 }
 0x2f0   :  { %v69_v41 = vsel %vm27_vm0, %v68_v40, 0.0 }
 0x2f1   :  { %70 = vst.msk [vmem:[#allocation2 + $0x28] sm:$0xff] %vm29_vm1, %v69_v41 }
 0x2f2   :  { %v82_v42 = vpop.permute.xlu1 %81 }
 0x2f3   :  { %v84_v43 = vsel %vm26_vm2, %v2822_v0, %v82_v42 }
 0x2f4   :  { %v85_v44 = vsel %vm27_vm0, %v84_v43, 0.0 }
 0x2f5   :  { %86 = vst.msk [vmem:[#allocation2 + $0x38] sm:$0xff] %vm29_vm1, %v85_v44 }
 0x2f6   :  { %v2900_v54 = vpop.permute.xlu1 %348 }
 0x2f8   :  { %v103_v46 = vld [vmem:[#allocation2 + $0x28] sm:$0xff] }
 0x2f9   :  { %2323 = vmatmul.mubr.msk.f32.vlgmr.msra.gmra.mrb[0].mxu1 %vm29_vm1, %v103_v46 }
 0x2fa   :  { %2524 = vmatpush3.bf16.msra.mxu1 %v2854_v33  ;;  %2325 = vmatprep.mubr.msk.f32.mxu1 %vm29_vm1, %v104_v45 }
 0x2fb   :  { %2525 = vmatprep.subr.bf16.mxu1 %v2785_v32 }
 0x2fc   :  { %v105_v47 = vld [vmem:[#allocation2 + $0x38] sm:$0xff] }
 0x2fd   :  { %2326 = vmatmul.mubr.msk.f32.gmra.mrb[2].mxu1 %vm29_vm1, %v105_v47 }
 0x2fe   :  { %2527 = vmatpush3.bf16.msra.mxu1 %v2860_v36  ;;  %2336 = vmatprep.mubr.msk.f32.mxu1 %vm2788_vm3, %v2789_v48 }
 0x2ff   :  { %2528 = vmatprep.subr.bf16.mxu1 %v2785_v32 }
 0x35f   :  { %v264_v49 = vpop.permute.xlu0 %263 }
 0x360   :  { %267 = vst.msk [vmem:[#allocation3] sm:$0xff] %vm266_vm4, %v264_v49  ;;  %2337 = vmatmul.mubr.msk.f32.vlgmr.msra.gmra.mrb[4].mxu1 %vm266_vm4, %v264_v49 }
 0x361   :  { %2530 = vmatpush3.bf16.msra.mxu1 %v2854_v33  ;;  %2347 = vmatprep.mubr.msk.f32.mxu1 %vm2788_vm3, %v2789_v48 }
 0x362   :  { %2531 = vmatprep.subr.bf16.mxu1 %v2785_v32 }
 0x365   :  { %2533 = vmatpush3.bf16.msra.mxu1 %v2860_v36 }
 0x366   :  { %2540 = vmatprep.subr.bf16.mxu1 %v2785_v32 }
 0x3cc   :  { %v2892_v50 = vpop.f32.mrb[0].mxu1 }
 0x3cd   :  { %v2894_v51 = vpop.f32.mrb[1].mxu1 }
 0x3d0   :  { %v2896_v52 = vpop.f32.mrb[2].mxu1 }
 0x3d1   :  { %v2898_v53 = vpop.f32.mrb[3].mxu1 }
 0x433   :  { %v336_v55 = vpop.f32.mrb[4].mxu1 }
 0x434   :  { %v351_v56 = vadd.f32 %v2900_v54, %v336_v55  ;;  %v2338_v57 = vpop.f32.mrb[5].mxu1  ;;  %v340_v59 = vadd.f32 %v336_v55, %v206_v58 }
 0x436   :  { %353 = vrot.lane.b32.xlu0 %v351_v56, %s2780_s0  ;;  %v2162_v60 = vmul.f32 -1.442695, %v340_v59 }
 0x438   :  { %2646 = vpow2.f32 %v2162_v60 }
 0x442   :  { %v2647_v61 = vpop.eup %2646 }
 0x443   :  { %v344_v62 = vadd.f32 1.0, %v2647_v61 }
 0x445   :  { %2648 = vrcp.f32 %v344_v62 }
 0x44f   :  { %v2649_v63 = vpop.eup %2648 }
 0x4a8   :  { %v354_v1 = vpop.permute.xlu0 %353 }
 0x4a9   :  { %v356_v2 = vmul.f32 %v2649_v63, %v354_v1 }
 0x4ab   :  { %358 = vrot.lane.b32.xlu1 %v356_v2, %s2780_s0 }
 0x51d   :  { %v359_v3 = vpop.permute.xlu1 %358 }
 0x51e   :  { %v361_v4 = vadd.f32 %v359_v3, %v206_v58 }
 0x520   :  { %2650 = vtanh.f32 %v361_v4 }
 0x52a   :  { %v2651_v5 = vpop.eup %2650 }
 0x52b   :  { %v363_v6 = vsub.f32 %v261_v38, %v2651_v5 }
 0x52d   :  { %365 = vrot.lane.b32.xlu0 %v363_v6, %s2783_s27 }
 0x59f   :  { %v366_v7 = vpop.permute.xlu0 %365 }
 0x5a0   :  { %v368_v9 = vmul.f32 %v2649_v63, %v366_v7 }
 0x5a2   :  { %370 = vrot.lane.b32.xlu1 %v368_v9, %s2784_s28 }
 0x5a6   :  { %41 = vrot.lane.b32.xlu1 %v2822_v0, %s2790_s3 }
 0x614   :  { %v371_v10 = vpop.permute.xlu1 %370 }
 0x615   :  { %v373_v11 = vadd.f32 %v2651_v5, %v371_v10 }
 0x617   :  { %375 = vrot.lane.b32.xlu0 %v373_v11, %s2780_s0 }
 0x618   :  { %v42_v12 = vpop.permute.xlu1 %41 }
 0x619   :  { %v44_v13 = vsel %vm26_vm2, %v2822_v0, %v42_v12  ;;  %v221_v12 = vadd.f32 %v2834_v8, %v2894_v51 }
 0x61a   :  { %v45_v14 = vsel %vm27_vm0, %v44_v13, 0.0 }
 0x61b   :  { %49 = vrot.lane.b32.xlu0 %v2822_v0, %s2791_s4  ;;  %46 = vst.msk [vmem:[#allocation2 + $0x10] sm:$0xff] %vm29_vm1, %v45_v14 }
 0x622   :  { %v100_v15 = vld [vmem:[#allocation2 + $0x10] sm:$0xff] }
 0x623   :  { %2319 = vmatprep.mubr.msk.f32.mxu0 %vm29_vm1, %v100_v15 }
 0x689   :  { %v376_v16 = vpop.permute.xlu0 %375 }
 0x68a   :  { %378 = vst.msk [vmem:[#allocation3 + $0x8] sm:$0xff] %vm266_vm4, %v376_v16  ;;  %2348 = vmatmul.mubr.msk.f32.vlgmr.msra.gmra.mrb[6].mxu1 %vm266_vm4, %v376_v16 }
 0x68b   :  { %2542 = vmatpush3.bf16.msra.mxu1 %v2854_v33  ;;  %2369 = vmatprep.mubr.msk.f32.mxu1 %vm2788_vm3, %v2789_v48 }
 0x68c   :  { %2543 = vmatprep.subr.bf16.mxu1 %v2785_v32 }
 0x68d   :  { %v50_v17 = vpop.permute.xlu0 %49 }
 0x68e   :  { %v52_v18 = vsel %vm26_vm2, %v2822_v0, %v50_v17 }
 0x68f   :  { %v53_v19 = vsel %vm27_vm0, %v52_v18, 0.0  ;;  %2545 = vmatpush3.bf16.msra.mxu1 %v2860_v36 }
 0x690   :  { %54 = vst.msk [vmem:[#allocation2 + $0x18] sm:$0xff] %vm29_vm1, %v53_v19  ;;  %2552 = vmatprep.subr.bf16.mxu1 %v2785_v32 }
 0x697   :  { %v101_v20 = vld [vmem:[#allocation2 + $0x18] sm:$0xff] }
 0x698   :  { %2320 = vmatmul.mubr.msk.f32.gmra.mrb[2].mxu0 %vm29_vm1, %v101_v20 }
 0x699   :  { %2358 = vmatprep.mubr.msk.f32.mxu0 %vm2788_vm3, %v2789_v48 }
 0x75d   :  { %v447_v21 = vpop.f32.mrb[6].mxu1 }
 0x75e   :  { %v458_v22 = vadd.f32 %v447_v21, %v2900_v54  ;;  %v2349_v23 = vpop.f32.mrb[7].mxu1 }
 0x760   :  { %460 = vrot.lane.b32.xlu1 %v458_v22, %s2780_s0 }
 0x76b   :  { %v2321_v0 = vpop.f32.mrb[2].mxu0 }
 0x76c   :  { %v210_v24 = vpop.f32.mrb[3].mxu0  ;;  %v216_v49 = vadd.f32 %v2321_v0, %v2834_v8 }
 0x76d   :  { %v211_v25 = vadd.f32 %v2834_v8, %v210_v24 }
 0x76f   :  { %v451_v26 = vadd.f32 %v447_v21, %v211_v25 }
 0x771   :  { %v2164_v27 = vmul.f32 -1.442695, %v451_v26 }
 0x773   :  { %2652 = vpow2.f32 %v2164_v27 }
 0x77d   :  { %v2653_v28 = vpop.eup %2652 }
 0x77e   :  { %v455_v29 = vadd.f32 1.0, %v2653_v28 }
 0x780   :  { %2654 = vrcp.f32 %v455_v29 }
 0x78a   :  { %v2655_v30 = vpop.eup %2654 }
 0x7d2   :  { %v461_v31 = vpop.permute.xlu1 %460 }
 0x7d3   :  { %v463_v34 = vmul.f32 %v2655_v30, %v461_v31 }
 0x7d5   :  { %465 = vrot.lane.b32.xlu0 %v463_v34, %s2780_s0 }
 0x847   :  { %v466_v35 = vpop.permute.xlu0 %465 }
 0x848   :  { %v468_v37 = vadd.f32 %v466_v35, %v211_v25 }
 0x84a   :  { %2656 = vtanh.f32 %v468_v37 }
 0x854   :  { %v2657_v38 = vpop.eup %2656 }
 0x855   :  { %v470_v39 = vsub.f32 %v373_v11, %v2657_v38 }
 0x857   :  { %472 = vrot.lane.b32.xlu1 %v470_v39, %s2783_s27 }
 0x8c9   :  { %v473_v40 = vpop.permute.xlu1 %472 }
 0x8ca   :  { %v475_v41 = vmul.f32 %v2655_v30, %v473_v40  ;;  %v226_v30 = vadd.f32 %v2892_v50, %v2834_v8  ;;  %v1022_v50 = vld [vmem:[#allocation4 + $0x30] sm:$0xff] }
 0x8cc   :  { %477 = vrot.lane.b32.xlu0 %v475_v41, %s2784_s28 }
 0x93e   :  { %v478_v42 = vpop.permute.xlu0 %477 }
 0x93f   :  { %v480_v43 = vadd.f32 %v2657_v38, %v478_v42 }
 0x941   :  { %482 = vrot.lane.b32.xlu1 %v480_v43, %s2780_s0 }
 0x9b3   :  { %v483_v44 = vpop.permute.xlu1 %482 }
 0x9b4   :  { %485 = vst.msk [vmem:[#allocation3 + $0x10] sm:$0xff] %vm266_vm4, %v483_v44  ;;  %2359 = vmatmul.mubr.msk.f32.vlgmr.msra.gmra.mrb[4].mxu0 %vm266_vm4, %v483_v44 }
 0x9b5   :  { %2548 = vmatpush3.bf16.msra.mxu0 %v2854_v33  ;;  %2380 = vmatprep.mubr.msk.f32.mxu0 %vm2788_vm3, %v2789_v48 }
 0x9b6   :  { %2549 = vmatprep.subr.bf16.mxu0 %v2785_v32 }
 0x9b9   :  { %2551 = vmatpush3.bf16.msra.mxu0 %v2860_v36 }
 0x9ba   :  { %2558 = vmatprep.subr.bf16.mxu0 %v2785_v32 }
 0xa87   :  { %v554_v45 = vpop.f32.mrb[4].mxu0 }
 0xa88   :  { %v565_v46 = vadd.f32 %v554_v45, %v2900_v54  ;;  %v2360_v47 = vpop.f32.mrb[5].mxu0  ;;  %v558_v55 = vadd.f32 %v554_v45, %v216_v49 }
 0xa8a   :  { %567 = vrot.lane.b32.xlu0 %v565_v46, %s2780_s0  ;;  %v2166_v56 = vmul.f32 -1.442695, %v558_v55  ;;  %v1023_v55 = vld [vmem:[#allocation4 + $0x38] sm:$0xff] }
 0xa8c   :  { %2658 = vpow2.f32 %v2166_v56  ;;  %v1024_v56 = vld [vmem:[#allocation4 + $0x40] sm:$0xff] }
 0xa96   :  { %v2659_v57 = vpop.eup %2658 }
 0xa97   :  { %v562_v58 = vadd.f32 1.0, %v2659_v57  ;;  %v2568_v57 = vpack.c.bf16 %v1024_v56, %v1023_v55 }
 0xa99   :  { %2660 = vrcp.f32 %v562_v58 }
 0xaa3   :  { %v2661_v59 = vpop.eup %2660 }
 0xafc   :  { %v568_v60 = vpop.permute.xlu0 %567 }
 0xafd   :  { %v570_v61 = vmul.f32 %v2661_v59, %v568_v60  ;;  %v1036_v60 = vld [vmem:[#allocation3 + $0x8] sm:$0xff] }
 0xaff   :  { %572 = vrot.lane.b32.xlu1 %v570_v61, %s2780_s0  ;;  %v1037_v61 = vld [vmem:[#allocation3 + $0x10] sm:$0xff] }
 0xb71   :  { %v573_v62 = vpop.permute.xlu1 %572 }
 0xb72   :  { %v575_v63 = vadd.f32 %v573_v62, %v216_v49 }
 0xb74   :  { %2662 = vtanh.f32 %v575_v63 }
 0xb7e   :  { %v2663_v1 = vpop.eup %2662 }
 0xb7f   :  { %v577_v2 = vsub.f32 %v480_v43, %v2663_v1  ;;  %v1021_v43 = vld [vmem:[#allocation4 + $0x28] sm:$0xff] }
 0xb80   :  { %v2564_v44 = vpack.c.bf16 %v1022_v50, %v1021_v43  ;;  %v1028_v43 = vld [vmem:[#allocation4 + $0x60] sm:$0xff] }
 0xb81   :  { %579 = vrot.lane.b32.xlu0 %v577_v2, %s2783_s27 }
 0xbf3   :  { %v580_v3 = vpop.permute.xlu0 %579 }
 0xbf4   :  { %v582_v4 = vmul.f32 %v2661_v59, %v580_v3  ;;  %v1035_v59 = vld [vmem:[#allocation3] sm:$0xff] }
 0xbf6   :  { %584 = vrot.lane.b32.xlu1 %v582_v4, %s2784_s28 }
 0xc68   :  { %v585_v5 = vpop.permute.xlu1 %584 }
 0xc69   :  { %v587_v6 = vadd.f32 %v2663_v1, %v585_v5  ;;  %v2999_v5 = vld [vmem:[#allocation4 + $0x8a] ss:$0 sm:$0xff] }
 0xc6b   :  { %589 = vrot.lane.b32.xlu0 %v587_v6, %s2780_s0 }
 0xcdd   :  { %v590_v7 = vpop.permute.xlu0 %589 }
 0xcde   :  { %592 = vst.msk [vmem:[#allocation3 + $0x18] sm:$0xff] %vm266_vm4, %v590_v7  ;;  %2370 = vmatmul.mubr.msk.f32.vlgmr.msra.gmra.mrb[8].mxu1 %vm266_vm4, %v590_v7 }
 0xcdf   :  { %2554 = vmatpush3.bf16.msra.mxu1 %v2854_v33  ;;  %2391 = vmatprep.mubr.msk.f32.mxu1 %vm2788_vm3, %v2789_v48 }
 0xce0   :  { %2555 = vmatprep.subr.bf16.mxu1 %v2785_v32 }
 0xce3   :  { %2557 = vmatpush3.bf16.msra.mxu1 %v2860_v36 }
 0xce4   :  { %2565 = vmatprep.subr.bf16.mxu1 %v2564_v44 }
 0xce5   :  { %v1038_v62 = vld [vmem:[#allocation3 + $0x18] sm:$0xff] }
 0xdb1   :  { %v661_v9 = vpop.f32.mrb[8].mxu1 }
 0xdb2   :  { %v672_v10 = vadd.f32 %v661_v9, %v2900_v54  ;;  %v2371_v11 = vpop.f32.mrb[9].mxu1  ;;  %v665_v13 = vadd.f32 %v661_v9, %v221_v12 }
 0xdb4   :  { %674 = vrot.lane.b32.xlu1 %v672_v10, %s2780_s0  ;;  %v2168_v14 = vmul.f32 -1.442695, %v665_v13 }
 0xdb6   :  { %2664 = vpow2.f32 %v2168_v14 }
 0xdc0   :  { %v2665_v15 = vpop.eup %2664 }
 0xdc1   :  { %v669_v16 = vadd.f32 1.0, %v2665_v15 }
 0xdc3   :  { %2666 = vrcp.f32 %v669_v16 }
 0xdcd   :  { %v2667_v17 = vpop.eup %2666 }
 0xe26   :  { %v675_v18 = vpop.permute.xlu1 %674 }
 0xe27   :  { %v677_v19 = vmul.f32 %v2667_v17, %v675_v18 }
 0xe29   :  { %679 = vrot.lane.b32.xlu0 %v677_v19, %s2780_s0 }
 0xe9b   :  { %v680_v20 = vpop.permute.xlu0 %679 }
 0xe9c   :  { %v682_v21 = vadd.f32 %v680_v20, %v221_v12  ;;  %v231_v20 = vadd.f32 %v2834_v8, %v2898_v53 }
 0xe9e   :  { %2668 = vtanh.f32 %v682_v21 }
 0xea8   :  { %v2669_v22 = vpop.eup %2668 }
 0xea9   :  { %v684_v23 = vsub.f32 %v587_v6, %v2669_v22 }
 0xeab   :  { %686 = vrot.lane.b32.xlu1 %v684_v23, %s2783_s27 }
 0xf1d   :  { %v687_v0 = vpop.permute.xlu1 %686 }
 0xf1e   :  { %v689_v51 = vmul.f32 %v2667_v17, %v687_v0  ;;  %v2175_v17 = vld [vmem:[#allocation4 + $0x8b] ss:$0 sm:$0xff] }
 0xf20   :  { %691 = vrot.lane.b32.xlu0 %v689_v51, %s2784_s28 }
 0xf92   :  { %v692_v24 = vpop.permute.xlu0 %691 }
 0xf93   :  { %v694_v25 = vadd.f32 %v2669_v22, %v692_v24 }
 0xf95   :  { %696 = vrot.lane.b32.xlu1 %v694_v25, %s2780_s0 }
0x1007   :  { %v697_v26 = vpop.permute.xlu1 %696 }
0x1008   :  { %699 = vst.msk [vmem:[#allocation3 + $0x20] sm:$0xff] %vm266_vm4, %v697_v26  ;;  %2381 = vmatmul.mubr.msk.f32.vlgmr.msra.gmra.mrb[6].mxu0 %vm266_vm4, %v697_v26 }
0x1009   :  { %2560 = vmatpush3.bf16.msra.mxu0 %v2854_v33  ;;  %2402 = vmatprep.mubr.msk.f32.mxu0 %vm2788_vm3, %v2789_v48 }
0x100a   :  { %2561 = vmatprep.subr.bf16.mxu0 %v2785_v32 }
0x100d   :  { %2563 = vmatpush3.bf16.msra.mxu0 %v2860_v36 }
0x100e   :  { %2572 = vmatprep.subr.bf16.mxu0 %v2785_v32 }
0x100f   :  { %v1039_v63 = vld [vmem:[#allocation3 + $0x20] sm:$0xff] }
0x10db   :  { %v768_v27 = vpop.f32.mrb[6].mxu0 }
0x10dc   :  { %v779_v28 = vadd.f32 %v768_v27, %v2900_v54  ;;  %v2382_v29 = vpop.f32.mrb[7].mxu0  ;;  %v772_v31 = vadd.f32 %v768_v27, %v226_v30 }
0x10de   :  { %781 = vrot.lane.b32.xlu0 %v779_v28, %s2780_s0  ;;  %v2170_v33 = vmul.f32 -1.442695, %v772_v31 }
0x10e0   :  { %2670 = vpow2.f32 %v2170_v33 }
0x10ea   :  { %v2671_v34 = vpop.eup %2670 }
0x10eb   :  { %v776_v35 = vadd.f32 1.0, %v2671_v34 }
0x10ed   :  { %2672 = vrcp.f32 %v776_v35 }
0x10f7   :  { %v2673_v37 = vpop.eup %2672 }
0x1150   :  { %v782_v38 = vpop.permute.xlu0 %781 }
0x1151   :  { %v784_v36 = vmul.f32 %v2673_v37, %v782_v38 }
0x1153   :  { %786 = vrot.lane.b32.xlu1 %v784_v36, %s2780_s0 }
0x11c5   :  { %v787_v39 = vpop.permute.xlu1 %786 }
0x11c6   :  { %v789_v40 = vadd.f32 %v787_v39, %v226_v30  ;;  %v1025_v39 = vld [vmem:[#allocation4 + $0x48] sm:$0xff] }
0x11c8   :  { %2674 = vtanh.f32 %v789_v40  ;;  %v1026_v40 = vld [vmem:[#allocation4 + $0x50] sm:$0xff] }
0x11d2   :  { %v2675_v41 = vpop.eup %2674 }
0x11d3   :  { %v791_v42 = vsub.f32 %v694_v25, %v2675_v41 }
0x11d5   :  { %793 = vrot.lane.b32.xlu0 %v791_v42, %s2783_s27  ;;  %v1027_v42 = vld [vmem:[#allocation4 + $0x58] sm:$0xff] }
0x11d6   :  { %v3026_v50 = vpack.c.bf16 %v1028_v43, %v1027_v42 }
0x1247   :  { %v794_v45 = vpop.permute.xlu0 %793 }
0x1248   :  { %v796_v46 = vmul.f32 %v2673_v37, %v794_v45 }
0x124a   :  { %798 = vrot.lane.b32.xlu1 %v796_v46, %s2784_s28 }
0x12bc   :  { %v799_v47 = vpop.permute.xlu1 %798 }
0x12bd   :  { %v2984_v49 = vadd.f32 %v2675_v41, %v799_v47  ;;  %v3022_v41 = vpack.c.bf16 %v1026_v40, %v1025_v39 }
0x12bf   :  { %803 = vrot.lane.b32.xlu0 %v2984_v49, %s2780_s0 }
0x1331   :  { %v804_v58 = vpop.permute.xlu0 %803 }
0x1332   :  { %806 = vst.msk [vmem:[#allocation3 + $0x28] sm:$0xff] %vm266_vm4, %v804_v58  ;;  %2392 = vmatmul.mubr.msk.f32.vlgmr.msra.gmra.mrb[10].mxu1 %vm266_vm4, %v804_v58 }
0x1333   :  { %2567 = vmatpush3.bf16.msra.mxu1 %v2564_v44  ;;  %2413 = vmatprep.mubr.msk.f32.mxu1 %vm266_vm4, %v1035_v59 }
0x1334   :  { %2569 = vmatprep.subr.bf16.mxu1 %v2568_v57 }
0x1337   :  { %2571 = vmatpush3.bf16.msra.mxu1 %v2568_v57 }
0x1338   :  { %2584 = vmatprep.subr.bf16.mxu1 %v2785_v32 }
0x1339   :  { %v1040_v1 = vld [vmem:[#allocation3 + $0x28] sm:$0xff] }
0x133a   :  { %2414 = vmatmul.mubr.msk.f32.vlgmr.msra.gmra.mrb[12].mxu1 %vm266_vm4, %v1036_v60 }
0x133b   :  { %2416 = vmatprep.mubr.msk.f32.mxu1 %vm266_vm4, %v1037_v61  ;;  %2586 = vmatpush3.bf16.msra.mxu1 %v3022_v41 }
0x133c   :  { %2587 = vmatprep.subr.bf16.mxu1 %v2785_v32 }
0x133e   :  { %2417 = vmatmul.mubr.msk.f32.gmra.mrb[14].mxu1 %vm266_vm4, %v1038_v62 }
0x133f   :  { %2419 = vmatprep.mubr.msk.f32.mxu1 %vm266_vm4, %v1039_v63  ;;  %2589 = vmatpush3.bf16.msra.mxu1 %v3026_v50 }
0x1340   :  { %2596 = vmatprep.subr.bf16.mxu1 %v2785_v32 }
0x1342   :  { %2420 = vmatmul.mubr.msk.f32.gmra.mrb[16].mxu1 %vm266_vm4, %v1040_v1 }
0x1405   :  { %v875_v2 = vpop.f32.mrb[10].mxu1 }
0x1406   :  { %v886_v3 = vadd.f32 %v875_v2, %v2900_v54  ;;  %v2393_v4 = vpop.f32.mrb[11].mxu1  ;;  %v879_v21 = vadd.f32 %v875_v2, %v231_v20 }
0x1408   :  { %888 = vrot.lane.b32.xlu1 %v886_v3, %s2780_s0  ;;  %v2172_v22 = vmul.f32 -1.442695, %v879_v21 }
0x140d   :  { %v3001_v6 = vpop.f32.mrb[12].mxu1 }
0x140e   :  { %v1137_v7 = vpop.f32.mrb[13].mxu1  ;;  %v1143_v61 = vadd.f32 %v3001_v6, %v2999_v5 }
0x140f   :  { %v1138_v9 = vadd.f32 %v2999_v5, %v1137_v7 }
0x1411   :  { %v2185_v10 = vmul.f32 -1.442695, %v1138_v9  ;;  %v3004_v11 = vpop.f32.mrb[14].mxu1 }
0x1412   :  { %v3006_v12 = vpop.f32.mrb[15].mxu1 }
0x1413   :  { %2676 = vpow2.f32 %v2185_v10 }
0x1415   :  { %v3008_v13 = vpop.f32.mrb[16].mxu1 }
0x1416   :  { %v3010_v14 = vpop.f32.mrb[17].mxu1 }
0x141d   :  { %v2677_v15 = vpop.eup %2676 }
0x141e   :  { %v1179_v16 = vadd.f32 1.0, %v2677_v15 }
0x1420   :  { %2678 = vrcp.f32 %v1179_v16 }
0x1421   :  { %2680 = vpow2.f32 %v2172_v22 }
0x142a   :  { %v2679_v18 = vpop.eup %2678 }
0x142b   :  { %v1182_v19 = vmul.f32 %v2679_v18, %v2175_v17  ;;  %v2681_v23 = vpop.eup %2680 }
0x142c   :  { %v883_v0 = vadd.f32 1.0, %v2681_v23 }
0x142d   :  { %1184 = vrot.lane.b32.xlu1 %v1182_v19, %s2780_s0  ;;  %v236_v19 = vadd.f32 %v2896_v52, %v2834_v8 }
0x142e   :  { %2682 = vrcp.f32 %v883_v0 }
0x1438   :  { %v2683_v51 = vpop.eup %2682 }
0x147a   :  { %v889_v24 = vpop.permute.xlu1 %888 }
0x147b   :  { %v891_v25 = vmul.f32 %v2683_v51, %v889_v24 }
0x147d   :  { %893 = vrot.lane.b32.xlu0 %v891_v25, %s2780_s0 }
0x149f   :  { %v1185_v26 = vpop.permute.xlu1 %1184 }
0x14a0   :  { %v1187_v27 = vadd.f32 %v1185_v26, %v1138_v9 }
0x14a2   :  { %2684 = vtanh.f32 %v1187_v27 }
0x14ac   :  { %v2685_v28 = vpop.eup %2684 }
0x14ad   :  { %1190 = vrot.lane.b32.xlu1 %v2685_v28, %s2783_s27 }
0x14ef   :  { %v894_v29 = vpop.permute.xlu0 %893 }
0x14f0   :  { %v896_v30 = vadd.f32 %v894_v29, %v231_v20 }
0x14f2   :  { %2686 = vtanh.f32 %v896_v30 }
0x14fc   :  { %v2687_v53 = vpop.eup %2686 }
0x14fd   :  { %v898_v31 = vsub.f32 %v2984_v49, %v2687_v53 }
0x14ff   :  { %900 = vrot.lane.b32.xlu0 %v898_v31, %s2783_s27 }
0x151f   :  { %v1191_v33 = vpop.permute.xlu1 %1190 }
0x1520   :  { %v1193_v34 = vmul.f32 %v2679_v18, %v1191_v33 }
0x1522   :  { %1195 = vrot.lane.b32.xlu1 %v1193_v34, %s2784_s28 }
0x1571   :  { %v901_v35 = vpop.permute.xlu0 %900 }
0x1572   :  { %v903_v37 = vmul.f32 %v2683_v51, %v901_v35 }
0x1574   :  { %905 = vrot.lane.b32.xlu0 %v903_v37, %s2784_s28  ;;  %v1148_v37 = vadd.f32 %v2999_v5, %v3006_v12 }
0x1594   :  { %v1196_v38 = vpop.permute.xlu1 %1195 }
0x1595   :  { %v1198_v36 = vsub.f32 %v2685_v28, %v1196_v38 }
0x1597   :  { %1200 = vrot.lane.b32.xlu1 %v1198_v36, %s2780_s0 }
0x15e6   :  { %v906_v44 = vpop.permute.xlu0 %905 }
0x15e7   :  { %v3030_v45 = vadd.f32 %v2687_v53, %v906_v44 }
0x15e9   :  { %910 = vrot.lane.b32.xlu0 %v3030_v45, %s2780_s0 }
0x15ed   :  { %1284 = vrot.lane.b32.xlu0 %v2175_v17, %s2780_s0 }
0x1609   :  { %v1201_v46 = vpop.permute.xlu1 %1200 }
0x160a   :  { %1203 = vst.msk [vmem:[#allocation2] sm:$0xff] %vm266_vm4, %v1201_v46 }
0x165b   :  { %v911_v47 = vpop.permute.xlu0 %910 }
0x165c   :  { %913 = vst.msk [vmem:[#allocation3 + $0x30] sm:$0xff] %vm266_vm4, %v911_v47  ;;  %2403 = vmatmul.mubr.msk.f32.vlgmr.msra.gmra.mrb[8].mxu0 %vm266_vm4, %v911_v47 }
0x165d   :  { %2574 = vmatpush3.bf16.msra.mxu0 %v3022_v41  ;;  %2433 = vmatprep.mubr.msk.f32.mxu0 %vm2788_vm3, %v2789_v48 }
0x165e   :  { %2575 = vmatprep.subr.bf16.mxu0 %v2785_v32 }
0x165f   :  { %v3052_v57 = vpop.permute.xlu0 %1284 }
0x1661   :  { %2577 = vmatpush3.bf16.msra.mxu0 %v3026_v50 }
0x1662   :  { %2578 = vmatprep.subr.bf16.mxu0 %v2785_v32 }
0x1663   :  { %v1041_v49 = vld [vmem:[#allocation3 + $0x30] sm:$0xff] }
0x1664   :  { %2434 = vmatmul.mubr.msk.f32.vlgmr.msra.gmra.mrb[10].mxu0 %vm266_vm4, %v1201_v46  ;;  %2422 = vmatprep.mubr.msk.f32.mxu1 %vm266_vm4, %v1041_v49 }
0x1665   :  { %2580 = vmatpush3.bf16.msra.mxu0 %v3022_v41  ;;  %2444 = vmatprep.mubr.msk.f32.mxu0 %vm2788_vm3, %v2789_v48 }
0x1666   :  { %2581 = vmatprep.subr.bf16.mxu0 %v2785_v32 }
0x1669   :  { %2583 = vmatpush3.bf16.msra.mxu0 %v3026_v50 }
0x166a   :  { %2590 = vmatprep.subr.bf16.mxu0 %v2785_v32 }
0x172f   :  { %v982_v55 = vpop.f32.mrb[8].mxu0 }
0x1730   :  { %v2404_v56 = vpop.f32.mrb[9].mxu0  ;;  %v993_v18 = vadd.f32 %v982_v55, %v2900_v54  ;;  %v986_v20 = vadd.f32 %v982_v55, %v236_v19 }
0x1732   :  { %v2174_v21 = vmul.f32 -1.442695, %v986_v20 }
0x1737   :  { %v1272_v58 = vpop.f32.mrb[10].mxu0 }
0x1738   :  { %v1287_v59 = vadd.f32 %v3052_v57, %v1272_v58  ;;  %v2435_v60 = vpop.f32.mrb[11].mxu0  ;;  %v1276_v62 = vadd.f32 %v1272_v58, %v1143_v61 }
0x173a   :  { %1289 = vrot.lane.b32.xlu1 %v1287_v59, %s2780_s0  ;;  %v2187_v63 = vmul.f32 -1.442695, %v1276_v62 }
0x173c   :  { %2688 = vpow2.f32 %v2187_v63 }
0x1746   :  { %v2689_v1 = vpop.eup %2688 }
0x1747   :  { %v1280_v2 = vadd.f32 1.0, %v2689_v1 }
0x1749   :  { %2690 = vrcp.f32 %v1280_v2 }
0x1753   :  { %v2691_v3 = vpop.eup %2690 }
0x17ac   :  { %v1290_v4 = vpop.permute.xlu1 %1289 }
0x17ad   :  { %v1292_v7 = vmul.f32 %v2691_v3, %v1290_v4  ;;  %v1153_v4 = vadd.f32 %v3004_v11, %v2999_v5 }
0x17af   :  { %1294 = vrot.lane.b32.xlu0 %v1292_v7, %s2780_s0 }
0x1821   :  { %v1295_v9 = vpop.permute.xlu0 %1294 }
0x1822   :  { %v1297_v10 = vadd.f32 %v1295_v9, %v1143_v61 }
0x1824   :  { %2692 = vtanh.f32 %v1297_v10 }
0x1825   :  { %2694 = vpow2.f32 %v2174_v21 }
0x182e   :  { %v2693_v15 = vpop.eup %2692 }
0x182f   :  { %v1299_v16 = vsub.f32 %v1198_v36, %v2693_v15  ;;  %v2695_v22 = vpop.eup %2694 }
0x1830   :  { %v990_v23 = vadd.f32 1.0, %v2695_v22 }
0x1831   :  { %1301 = vrot.lane.b32.xlu1 %v1299_v16, %s2783_s27 }
0x1832   :  { %2696 = vrcp.f32 %v990_v23 }
0x183c   :  { %v2697_v24 = vpop.eup %2696 }
0x18a3   :  { %v1302_v17 = vpop.permute.xlu1 %1301 }
0x18a4   :  { %v1304_v6 = vmul.f32 %v2691_v3, %v1302_v17 }
0x18a6   :  { %1306 = vrot.lane.b32.xlu0 %v1304_v6, %s2784_s28 }
0x18aa   :  { %995 = vrot.lane.b32.xlu0 %v993_v18, %s2780_s0 }
0x1918   :  { %v1307_v0 = vpop.permute.xlu0 %1306 }
0x1919   :  { %v1309_v51 = vadd.f32 %v2693_v15, %v1307_v0 }
0x191b   :  { %1311 = vrot.lane.b32.xlu1 %v1309_v51, %s2780_s0 }
0x191c   :  { %v996_v25 = vpop.permute.xlu0 %995 }
0x191d   :  { %v998_v26 = vmul.f32 %v2697_v24, %v996_v25 }
0x191f   :  { %1000 = vrot.lane.b32.xlu0 %v998_v26, %s2780_s0 }
0x198d   :  { %v1312_v54 = vpop.permute.xlu1 %1311 }
0x198e   :  { %1314 = vst.msk [vmem:[#allocation2 + $0x8] sm:$0xff] %vm266_vm4, %v1312_v54  ;;  %2445 = vmatmul.mubr.msk.f32.vlgmr.msra.gmra.mrb[12].mxu0 %vm266_vm4, %v1312_v54  ;;  %v1158_v54 = vadd.f32 %v2999_v5, %v3010_v14 }
0x198f   :  { %2592 = vmatpush3.bf16.msra.mxu0 %v3022_v41  ;;  %2466 = vmatprep.mubr.msk.f32.mxu0 %vm2788_vm3, %v2789_v48 }
0x1990   :  { %2593 = vmatprep.subr.bf16.mxu0 %v2785_v32 }
0x1991   :  { %v1001_v8 = vpop.permute.xlu0 %1000 }
0x1992   :  { %v1003_v52 = vadd.f32 %v1001_v8, %v236_v19 }
0x1993   :  { %2595 = vmatpush3.bf16.msra.mxu0 %v3026_v50 }
0x1994   :  { %2698 = vtanh.f32 %v1003_v52  ;;  %2602 = vmatprep.subr.bf16.mxu0 %v2785_v32 }
0x199e   :  { %v2699_v27 = vpop.eup %2698 }
0x199f   :  { %v1005_v28 = vsub.f32 %v3030_v45, %v2699_v27 }
0x19a1   :  { %1007 = vrot.lane.b32.xlu0 %v1005_v28, %s2783_s27 }
0x1a13   :  { %v1008_v29 = vpop.permute.xlu0 %1007 }
0x1a14   :  { %v1010_v30 = vmul.f32 %v2697_v24, %v1008_v29 }
0x1a16   :  { %1012 = vrot.lane.b32.xlu0 %v1010_v30, %s2784_s28 }
0x1a61   :  { %v1383_v53 = vpop.f32.mrb[12].mxu0 }
0x1a62   :  { %v1394_v31 = vadd.f32 %v1383_v53, %v3052_v57  ;;  %v2446_v33 = vpop.f32.mrb[13].mxu0  ;;  %v1387_v38 = vadd.f32 %v1383_v53, %v1148_v37 }
0x1a64   :  { %1396 = vrot.lane.b32.xlu1 %v1394_v31, %s2780_s0  ;;  %v2189_v36 = vmul.f32 -1.442695, %v1387_v38 }
0x1a66   :  { %2700 = vpow2.f32 %v2189_v36 }
0x1a70   :  { %v2701_v39 = vpop.eup %2700 }
0x1a71   :  { %v1391_v40 = vadd.f32 1.0, %v2701_v39 }
0x1a73   :  { %2702 = vrcp.f32 %v1391_v40 }
0x1a7d   :  { %v2703_v42 = vpop.eup %2702 }
0x1a88   :  { %v1013_v34 = vpop.permute.xlu0 %1012 }
0x1a89   :  { %v1015_v35 = vadd.f32 %v2699_v27, %v1013_v34 }
0x1a8b   :  { %1017 = vrot.lane.b32.xlu0 %v1015_v35, %s2780_s0 }
0x1ad6   :  { %v1397_v43 = vpop.permute.xlu1 %1396 }
0x1ad7   :  { %v1399_v44 = vmul.f32 %v2703_v42, %v1397_v43 }
0x1ad9   :  { %1401 = vrot.lane.b32.xlu1 %v1399_v44, %s2780_s0  ;;  %v1163_v44 = vadd.f32 %v3008_v13, %v2999_v5  ;;  %v1958_v13 = vld [vmem:[#allocation4 + $0x70] sm:$0xff] }
0x1afd   :  { %v1018_v45 = vpop.permute.xlu0 %1017 }
0x1afe   :  { %1020 = vst.msk [vmem:[#allocation3 + $0x38] sm:$0xff] %vm266_vm4, %v1018_v45 }
0x1b05   :  { %v1042_v46 = vld [vmem:[#allocation3 + $0x38] sm:$0xff] }
0x1b06   :  { %2423 = vmatmul.mubr.msk.f32.gmra.mrb[18].mxu1 %vm266_vm4, %v1042_v46 }
0x1b07   :  { %2455 = vmatprep.mubr.msk.f32.mxu1 %vm2788_vm3, %v2789_v48 }
0x1b4b   :  { %v1402_v12 = vpop.permute.xlu1 %1401 }
0x1b4c   :  { %v1404_v47 = vadd.f32 %v1402_v12, %v1148_v37 }
0x1b4e   :  { %2704 = vtanh.f32 %v1404_v47 }
0x1b58   :  { %v2705_v49 = vpop.eup %2704 }
0x1b59   :  { %v1406_v55 = vsub.f32 %v1309_v51, %v2705_v49 }
0x1b5b   :  { %1408 = vrot.lane.b32.xlu1 %v1406_v55, %s2783_s27 }
0x1bcd   :  { %v1409_v56 = vpop.permute.xlu1 %1408 }
0x1bce   :  { %v1411_v58 = vmul.f32 %v2703_v42, %v1409_v56 }
0x1bd0   :  { %1413 = vrot.lane.b32.xlu1 %v1411_v58, %s2784_s28  ;;  %v1957_v58 = vld [vmem:[#allocation4 + $0x68] sm:$0xff] }
0x1bd9   :  { %v3090_v59 = vpop.f32.mrb[18].mxu1 }
0x1bda   :  { %v3092_v60 = vpop.f32.mrb[19].mxu1 }
0x1c42   :  { %v1414_v61 = vpop.permute.xlu1 %1413 }
0x1c43   :  { %v1416_v62 = vadd.f32 %v2705_v49, %v1414_v61  ;;  %v2614_v61 = vpack.c.bf16 %v1958_v13, %v1957_v58 }
0x1c45   :  { %1418 = vrot.lane.b32.xlu1 %v1416_v62, %s2780_s0 }
0x1cb7   :  { %v1419_v63 = vpop.permute.xlu1 %1418 }
0x1cb8   :  { %1421 = vst.msk [vmem:[#allocation2 + $0x10] sm:$0xff] %vm266_vm4, %v1419_v63  ;;  %2456 = vmatmul.mubr.msk.f32.vlgmr.msra.gmra.mrb[20].mxu1 %vm266_vm4, %v1419_v63 }
0x1cb9   :  { %2598 = vmatpush3.bf16.msra.mxu1 %v3022_v41  ;;  %2477 = vmatprep.mubr.msk.f32.mxu1 %vm2788_vm3, %v2789_v48 }
0x1cba   :  { %2599 = vmatprep.subr.bf16.mxu1 %v2785_v32 }
0x1cbd   :  { %2601 = vmatpush3.bf16.msra.mxu1 %v3026_v50 }
0x1cbe   :  { %2608 = vmatprep.subr.bf16.mxu1 %v2785_v32 }
0x1d8b   :  { %v1490_v1 = vpop.f32.mrb[20].mxu1 }
0x1d8c   :  { %v1501_v2 = vadd.f32 %v1490_v1, %v3052_v57  ;;  %v2457_v3 = vpop.f32.mrb[21].mxu1  ;;  %v1494_v7 = vadd.f32 %v1490_v1, %v1153_v4 }
0x1d8d   :  { %v1959_v3 = vld [vmem:[#allocation4 + $0x78] sm:$0xff] }
0x1d8e   :  { %1503 = vrot.lane.b32.xlu0 %v1501_v2, %s2780_s0  ;;  %v2191_v9 = vmul.f32 -1.442695, %v1494_v7 }
0x1d90   :  { %2706 = vpow2.f32 %v2191_v9 }
0x1d9a   :  { %v2707_v10 = vpop.eup %2706 }
0x1d9b   :  { %v1498_v15 = vadd.f32 1.0, %v2707_v10  ;;  %v1964_v10 = vld [vmem:[#allocation2] sm:$0xff] }
0x1d9d   :  { %2708 = vrcp.f32 %v1498_v15  ;;  %v1965_v15 = vld [vmem:[#allocation2 + $0x8] sm:$0xff] }
0x1da7   :  { %v2709_v16 = vpop.eup %2708 }
0x1e00   :  { %v1504_v17 = vpop.permute.xlu0 %1503 }
0x1e01   :  { %v1506_v6 = vmul.f32 %v2709_v16, %v1504_v17 }
0x1e03   :  { %1508 = vrot.lane.b32.xlu1 %v1506_v6, %s2780_s0 }
0x1e75   :  { %v1509_v18 = vpop.permute.xlu1 %1508 }
0x1e76   :  { %v1511_v19 = vadd.f32 %v1509_v18, %v1153_v4  ;;  %v1960_v4 = vld [vmem:[#allocation4 + $0x80] sm:$0xff] }
0x1e77   :  { %v2618_v7 = vpack.c.bf16 %v1960_v4, %v1959_v3 }
0x1e78   :  { %2710 = vtanh.f32 %v1511_v19 }
0x1e82   :  { %v2711_v20 = vpop.eup %2710 }
0x1e83   :  { %v1513_v21 = vsub.f32 %v1416_v62, %v2711_v20 }
0x1e85   :  { %1515 = vrot.lane.b32.xlu0 %v1513_v21, %s2783_s27 }
0x1ef7   :  { %v1516_v22 = vpop.permute.xlu0 %1515 }
0x1ef8   :  { %v1518_v11 = vmul.f32 %v2709_v16, %v1516_v22  ;;  %v1966_v16 = vld [vmem:[#allocation2 + $0x10] sm:$0xff]  ;;  %v3154_v22 = vld [vmem:[#allocation4 + $0x8c] ss:$0 sm:$0xff] }
0x1efa   :  { %1520 = vrot.lane.b32.xlu1 %v1518_v11, %s2784_s28 }
0x1f6c   :  { %v1521_v23 = vpop.permute.xlu1 %1520 }
0x1f6d   :  { %v1523_v0 = vadd.f32 %v2711_v20, %v1521_v23 }
0x1f6f   :  { %1525 = vrot.lane.b32.xlu0 %v1523_v0, %s2780_s0 }
0x1fe1   :  { %v1526_v51 = vpop.permute.xlu0 %1525 }
0x1fe2   :  { %1528 = vst.msk [vmem:[#allocation2 + $0x18] sm:$0xff] %vm266_vm4, %v1526_v51  ;;  %2467 = vmatmul.mubr.msk.f32.vlgmr.msra.gmra.mrb[14].mxu0 %vm266_vm4, %v1526_v51 }
0x1fe3   :  { %2604 = vmatpush3.bf16.msra.mxu0 %v3022_v41  ;;  %2488 = vmatprep.mubr.msk.f32.mxu0 %vm2788_vm3, %v2789_v48 }
0x1fe4   :  { %2605 = vmatprep.subr.bf16.mxu0 %v2785_v32 }
0x1fe7   :  { %2607 = vmatpush3.bf16.msra.mxu0 %v3026_v50 }
0x1fe8   :  { %2615 = vmatprep.subr.bf16.mxu0 %v2614_v61 }
0x1fe9   :  { %v1967_v17 = vld [vmem:[#allocation2 + $0x18] sm:$0xff] }
0x20b5   :  { %v1597_v24 = vpop.f32.mrb[14].mxu0 }
0x20b6   :  { %v1608_v25 = vadd.f32 %v1597_v24, %v3052_v57  ;;  %v2468_v26 = vpop.f32.mrb[15].mxu0  ;;  %v1601_v8 = vadd.f32 %v1597_v24, %v1158_v54 }
0x20b8   :  { %1610 = vrot.lane.b32.xlu1 %v1608_v25, %s2780_s0  ;;  %v2193_v52 = vmul.f32 -1.442695, %v1601_v8 }
0x20ba   :  { %2712 = vpow2.f32 %v2193_v52 }
0x20c4   :  { %v2713_v27 = vpop.eup %2712 }
0x20c5   :  { %v1605_v28 = vadd.f32 1.0, %v2713_v27 }
0x20c7   :  { %2714 = vrcp.f32 %v1605_v28 }
0x20d1   :  { %v2715_v29 = vpop.eup %2714 }
0x212a   :  { %v1611_v30 = vpop.permute.xlu1 %1610 }
0x212b   :  { %v1613_v53 = vmul.f32 %v2715_v29, %v1611_v30 }
0x212d   :  { %1615 = vrot.lane.b32.xlu0 %v1613_v53, %s2780_s0  ;;  %v3164_v53 = vld [vmem:[#allocation4 + $0x8e] ss:$0 sm:$0xff] }
0x219f   :  { %v1616_v31 = vpop.permute.xlu0 %1615 }
0x21a0   :  { %v1618_v33 = vadd.f32 %v1616_v31, %v1158_v54 }
0x21a2   :  { %2716 = vtanh.f32 %v1618_v33 }
0x21ac   :  { %v2717_v34 = vpop.eup %2716 }
0x21ad   :  { %v1620_v35 = vsub.f32 %v1523_v0, %v2717_v34 }
0x21af   :  { %1622 = vrot.lane.b32.xlu1 %v1620_v35, %s2783_s27 }
0x2221   :  { %v1623_v37 = vpop.permute.xlu1 %1622 }
0x2222   :  { %v1625_v14 = vmul.f32 %v2715_v29, %v1623_v37  ;;  %v3162_v29 = vld [vmem:[#allocation4 + $0x8d] ss:$0 sm:$0xff] }
0x2224   :  { %1627 = vrot.lane.b32.xlu0 %v1625_v14, %s2784_s28 }
0x2296   :  { %v1628_v38 = vpop.permute.xlu0 %1627 }
0x2297   :  { %v1630_v36 = vadd.f32 %v2717_v34, %v1628_v38 }
0x2299   :  { %1632 = vrot.lane.b32.xlu1 %v1630_v36, %s2780_s0 }
0x230b   :  { %v1633_v39 = vpop.permute.xlu1 %1632 }
0x230c   :  { %1635 = vst.msk [vmem:[#allocation2 + $0x20] sm:$0xff] %vm266_vm4, %v1633_v39  ;;  %2478 = vmatmul.mubr.msk.f32.vlgmr.msra.gmra.mrb[22].mxu1 %vm266_vm4, %v1633_v39 }
0x230d   :  { %2610 = vmatpush3.bf16.msra.mxu1 %v3022_v41  ;;  %2499 = vmatprep.mubr.msk.f32.mxu1 %vm2788_vm3, %v2789_v48 }
0x230e   :  { %2611 = vmatprep.subr.bf16.mxu1 %v2785_v32 }
0x2311   :  { %2613 = vmatpush3.bf16.msra.mxu1 %v3026_v50 }
0x2313   :  { %v1968_v6 = vld [vmem:[#allocation2 + $0x20] sm:$0xff] }
0x23df   :  { %v1704_v40 = vpop.f32.mrb[22].mxu1 }
0x23e0   :  { %v1715_v42 = vadd.f32 %v1704_v40, %v3052_v57  ;;  %v2479_v43 = vpop.f32.mrb[23].mxu1  ;;  %v1708_v45 = vadd.f32 %v1704_v40, %v1163_v44 }
0x23e2   :  { %1717 = vrot.lane.b32.xlu0 %v1715_v42, %s2780_s0  ;;  %v2195_v46 = vmul.f32 -1.442695, %v1708_v45 }
0x23e4   :  { %2718 = vpow2.f32 %v2195_v46 }
0x23ee   :  { %v2719_v41 = vpop.eup %2718 }
0x23ef   :  { %v1712_v12 = vadd.f32 1.0, %v2719_v41 }
0x23f1   :  { %2720 = vrcp.f32 %v1712_v12 }
0x23fb   :  { %v2721_v48 = vpop.eup %2720 }
0x2454   :  { %v1718_v47 = vpop.permute.xlu0 %1717 }
0x2455   :  { %v1720_v32 = vmul.f32 %v2721_v48, %v1718_v47 }
0x2457   :  { %1722 = vrot.lane.b32.xlu1 %v1720_v32, %s2780_s0 }
0x24c9   :  { %v1723_v50 = vpop.permute.xlu1 %1722 }
0x24ca   :  { %v1725_v49 = vadd.f32 %v1723_v50, %v1163_v44 }
0x24cc   :  { %2722 = vtanh.f32 %v1725_v49 }
0x24d6   :  { %v2723_v55 = vpop.eup %2722 }
0x24d7   :  { %v1727_v56 = vsub.f32 %v1630_v36, %v2723_v55 }
0x24d9   :  { %1729 = vrot.lane.b32.xlu0 %v1727_v56, %s2783_s27 }
0x254b   :  { %v1730_v62 = vpop.permute.xlu0 %1729 }
0x254c   :  { %v1732_v63 = vmul.f32 %v2721_v48, %v1730_v62  ;;  %v1168_v48 = vadd.f32 %v2999_v5, %v3092_v60 }
0x254e   :  { %1734 = vrot.lane.b32.xlu1 %v1732_v63, %s2784_s28 }
0x25c0   :  { %v1735_v1 = vpop.permute.xlu1 %1734 }
0x25c1   :  { %v3140_v2 = vadd.f32 %v2723_v55, %v1735_v1 }
0x25c3   :  { %1739 = vrot.lane.b32.xlu0 %v3140_v2, %s2780_s0 }
0x2635   :  { %v1740_v9 = vpop.permute.xlu0 %1739 }
0x2636   :  { %1742 = vst.msk [vmem:[#allocation2 + $0x28] sm:$0xff] %vm266_vm4, %v1740_v9  ;;  %2489 = vmatmul.mubr.msk.f32.vlgmr.msra.gmra.mrb[16].mxu0 %vm266_vm4, %v1740_v9 }
0x2637   :  { %2617 = vmatpush3.bf16.msra.mxu0 %v2614_v61  ;;  %2510 = vmatprep.mubr.msk.f32.mxu0 %vm266_vm4, %v1964_v10 }
0x2638   :  { %2619 = vmatprep.subr.bf16.mxu0 %v2618_v7 }
0x263b   :  { %2621 = vmatpush3.bf16.msra.mxu0 %v2618_v7 }
0x263d   :  { %v1969_v18 = vld [vmem:[#allocation2 + $0x28] sm:$0xff] }
0x263e   :  { %2511 = vmatmul.mubr.msk.f32.vlgmr.msra.gmra.mrb[18].mxu0 %vm266_vm4, %v1965_v15 }
0x263f   :  { %2513 = vmatprep.mubr.msk.f32.mxu0 %vm266_vm4, %v1966_v16  ;;  %v1173_v16 = vadd.f32 %v3090_v59, %v2999_v5 }
0x2642   :  { %2514 = vmatmul.mubr.msk.f32.gmra.mrb[20].mxu0 %vm266_vm4, %v1967_v17 }
0x2643   :  { %2516 = vmatprep.mubr.msk.f32.mxu0 %vm266_vm4, %v1968_v6 }
0x2646   :  { %2517 = vmatmul.mubr.msk.f32.gmra.mrb[22].mxu0 %vm266_vm4, %v1969_v18 }
0x2709   :  { %v1811_v19 = vpop.f32.mrb[16].mxu0 }
0x270a   :  { %v1822_v20 = vadd.f32 %v1811_v19, %v3052_v57  ;;  %v2490_v21 = vpop.f32.mrb[17].mxu0  ;;  %v1815_v47 = vadd.f32 %v1811_v19, %v1168_v48 }
0x270c   :  { %1824 = vrot.lane.b32.xlu1 %v1822_v20, %s2780_s0  ;;  %v2197_v32 = vmul.f32 -1.442695, %v1815_v47 }
0x2711   :  { %v2512_v11 = vpop.f32.mrb[18].mxu0 }
0x2712   :  { %v2072_v23 = vadd.f32 %v2512_v11, %v3154_v22  ;;  %v2066_v0 = vpop.f32.mrb[19].mxu0 }
0x2713   :  { %v2067_v51 = vadd.f32 %v3154_v22, %v2066_v0 }
0x2714   :  { %2724 = vtanh.f32 %v2072_v23 }
0x2715   :  { %2726 = vtanh.f32 %v2067_v51  ;;  %v2515_v24 = vpop.f32.mrb[20].mxu0 }
0x2716   :  { %v2082_v25 = vadd.f32 %v2515_v24, %v3154_v22  ;;  %v2076_v26 = vpop.f32.mrb[21].mxu0 }
0x2717   :  { %v2077_v54 = vadd.f32 %v3154_v22, %v2076_v26 }
0x2718   :  { %2728 = vtanh.f32 %v2082_v25 }
0x2719   :  { %2730 = vtanh.f32 %v2077_v54  ;;  %v2518_v8 = vpop.f32.mrb[22].mxu0 }
0x271a   :  { %v2092_v52 = vadd.f32 %v2518_v8, %v3154_v22  ;;  %v2086_v27 = vpop.f32.mrb[23].mxu0 }
0x271b   :  { %v2087_v28 = vadd.f32 %v3154_v22, %v2086_v27 }
0x271c   :  { %2732 = vtanh.f32 %v2092_v52 }
0x271d   :  { %2734 = vtanh.f32 %v2087_v28 }
0x271e   :  { %v2725_v30 = vpop.eup %2724  ;;  %2736 = vpow2.f32 %v2197_v32 }
0x271f   :  { %v2727_v31 = vpop.eup %2726  ;;  %v2118_v33 = vmul.f32 %v2725_v30, %v3162_v29 }
0x2720   :  { %v2117_v34 = vmul.f32 %v2727_v31, %v3162_v29 }
0x2721   :  { %v2130_v35 = vadd.f32 %v3164_v53, %v2118_v33 }
0x2722   :  { %v2729_v37 = vpop.eup %2728  ;;  %v2129_v14 = vadd.f32 %v3164_v53, %v2117_v34 }
0x2723   :  { %v2731_v38 = vpop.eup %2730  ;;  %2138 = vst [vmem:[%s3230_s2 + $0x8] sm:$0xff] %v2130_v35  ;;  %v2120_v36 = vmul.f32 %v2729_v37, %v3162_v29 }
0x2724   :  { %2137 = vst [vmem:[%s3230_s2] sm:$0xff] %v2129_v14  ;;  %v2119_v39 = vmul.f32 %v2731_v38, %v3162_v29 }
0x2725   :  { %v2132_v40 = vadd.f32 %v3164_v53, %v2120_v36 }
0x2726   :  { %v2733_v42 = vpop.eup %2732  ;;  %v2131_v43 = vadd.f32 %v3164_v53, %v2119_v39 }
0x2727   :  { %v2735_v44 = vpop.eup %2734  ;;  %2140 = vst [vmem:[%s3230_s2 + $0x18] sm:$0xff] %v2132_v40  ;;  %v2122_v45 = vmul.f32 %v2733_v42, %v3162_v29 }
0x2728   :  { %2139 = vst [vmem:[%s3230_s2 + $0x10] sm:$0xff] %v2131_v43  ;;  %v2121_v46 = vmul.f32 %v2735_v44, %v3162_v29  ;;  %v2737_v50 = vpop.eup %2736 }
0x2729   :  { %v2134_v41 = vadd.f32 %v3164_v53, %v2122_v45  ;;  %v1819_v49 = vadd.f32 1.0, %v2737_v50 }
0x272a   :  { %v2133_v12 = vadd.f32 %v3164_v53, %v2121_v46 }
0x272b   :  { %2142 = vst [vmem:[%s3230_s2 + $0x28] sm:$0xff] %v2134_v41  ;;  %2738 = vrcp.f32 %v1819_v49 }
0x272c   :  { %2141 = vst [vmem:[%s3230_s2 + $0x20] sm:$0xff] %v2133_v12 }
0x2735   :  { %v2739_v55 = vpop.eup %2738 }
0x277e   :  { %v1825_v56 = vpop.permute.xlu1 %1824 }
0x277f   :  { %v1827_v58 = vmul.f32 %v2739_v55, %v1825_v56 }
0x2781   :  { %1829 = vrot.lane.b32.xlu0 %v1827_v58, %s2780_s0 }
0x27f3   :  { %v1830_v13 = vpop.permute.xlu0 %1829 }
0x27f4   :  { %v1832_v61 = vadd.f32 %v1830_v13, %v1168_v48 }
0x27f6   :  { %2740 = vtanh.f32 %v1832_v61 }
0x2800   :  { %v2741_v62 = vpop.eup %2740 }
0x2801   :  { %v1834_v63 = vsub.f32 %v3140_v2, %v2741_v62 }
0x2803   :  { %1836 = vrot.lane.b32.xlu1 %v1834_v63, %s2783_s27 }
0x2875   :  { %v1837_v60 = vpop.permute.xlu1 %1836 }
0x2876   :  { %v1839_v1 = vmul.f32 %v2739_v55, %v1837_v60 }
0x2878   :  { %1841 = vrot.lane.b32.xlu0 %v1839_v1, %s2784_s28 }
0x28ea   :  { %v1842_v3 = vpop.permute.xlu0 %1841 }
0x28eb   :  { %v1844_v4 = vadd.f32 %v2741_v62, %v1842_v3 }
0x28ed   :  { %1846 = vrot.lane.b32.xlu1 %v1844_v4, %s2780_s0 }
0x295f   :  { %v1847_v7 = vpop.permute.xlu1 %1846 }
0x2960   :  { %1849 = vst.msk [vmem:[#allocation2 + $0x30] sm:$0xff] %vm266_vm4, %v1847_v7  ;;  %2500 = vmatmul.mubr.msk.f32.vlgmr.msra.gmra.mrb[24].mxu1 %vm266_vm4, %v1847_v7 }
0x2967   :  { %v1970_v9 = vld [vmem:[#allocation2 + $0x30] sm:$0xff] }
0x2968   :  { %2519 = vmatprep.mubr.msk.f32.mxu0 %vm266_vm4, %v1970_v9 }
0x2a33   :  { %v1918_v10 = vpop.f32.mrb[24].mxu1 }
0x2a34   :  { %v1929_v2 = vadd.f32 %v1918_v10, %v3052_v57  ;;  %v2501_v15 = vpop.f32.mrb[25].mxu1  ;;  %v1922_v17 = vadd.f32 %v1918_v10, %v1173_v16 }
0x2a36   :  { %1931 = vrot.lane.b32.xlu0 %v1929_v2, %s2780_s0  ;;  %v2199_v6 = vmul.f32 -1.442695, %v1922_v17 }
0x2a38   :  { %2742 = vpow2.f32 %v2199_v6 }
0x2a42   :  { %v2743_v18 = vpop.eup %2742 }
0x2a43   :  { %v1926_v19 = vadd.f32 1.0, %v2743_v18 }
0x2a45   :  { %2744 = vrcp.f32 %v1926_v19 }
0x2a4f   :  { %v2745_v20 = vpop.eup %2744 }
0x2aa8   :  { %v1932_v21 = vpop.permute.xlu0 %1931 }
0x2aa9   :  { %v1934_v11 = vmul.f32 %v2745_v20, %v1932_v21 }
0x2aab   :  { %1936 = vrot.lane.b32.xlu1 %v1934_v11, %s2780_s0 }
0x2b1d   :  { %v1937_v23 = vpop.permute.xlu1 %1936 }
0x2b1e   :  { %v1939_v0 = vadd.f32 %v1937_v23, %v1173_v16 }
0x2b20   :  { %2746 = vtanh.f32 %v1939_v0 }
0x2b2a   :  { %v2747_v57 = vpop.eup %2746 }
0x2b2b   :  { %v1941_v51 = vsub.f32 %v1844_v4, %v2747_v57 }
0x2b2d   :  { %1943 = vrot.lane.b32.xlu0 %v1941_v51, %s2783_s27 }
0x2b9f   :  { %v1944_v24 = vpop.permute.xlu0 %1943 }
0x2ba0   :  { %v1946_v5 = vmul.f32 %v2745_v20, %v1944_v24 }
0x2ba2   :  { %1948 = vrot.lane.b32.xlu1 %v1946_v5, %s2784_s28 }
0x2c14   :  { %v1949_v59 = vpop.permute.xlu1 %1948 }
0x2c15   :  { %v1951_v25 = vadd.f32 %v2747_v57, %v1949_v59 }
0x2c17   :  { %1953 = vrot.lane.b32.xlu0 %v1951_v25, %s2780_s0 }
0x2c89   :  { %v1954_v26 = vpop.permute.xlu0 %1953 }
0x2c8a   :  { %1956 = vst.msk [vmem:[#allocation2 + $0x38] sm:$0xff] %vm266_vm4, %v1954_v26 }
0x2c91   :  { %v1971_v54 = vld [vmem:[#allocation2 + $0x38] sm:$0xff] }
0x2c92   :  { %2520 = vmatmul.mubr.msk.f32.gmra.mrb[24].mxu0 %vm266_vm4, %v1971_v54 }
0x2d65   :  { %v2521_v8 = vpop.f32.mrb[24].mxu0 }
0x2d66   :  { %v2102_v52 = vadd.f32 %v2521_v8, %v3154_v22  ;;  %v2096_v27 = vpop.f32.mrb[25].mxu0 }
0x2d67   :  { %v2097_v28 = vadd.f32 %v3154_v22, %v2096_v27 }
0x2d68   :  { %2748 = vtanh.f32 %v2102_v52 }
0x2d69   :  { %2750 = vtanh.f32 %v2097_v28 }
0x2d72   :  { %v2749_v30 = vpop.eup %2748 }
0x2d73   :  { %v2751_v31 = vpop.eup %2750  ;;  %v2124_v33 = vmul.f32 %v2749_v30, %v3162_v29 }
0x2d74   :  { %v2123_v34 = vmul.f32 %v2751_v31, %v3162_v29 }
0x2d75   :  { %v2136_v35 = vadd.f32 %v3164_v53, %v2124_v33 }
0x2d76   :  { %v2135_v37 = vadd.f32 %v3164_v53, %v2123_v34 }
0x2d77   :  { %2144 = vst [vmem:[%s3230_s2 + $0x38] sm:$0xff] %v2136_v35 }
0x2d78   :  { %2143 = vst [vmem:[%s3230_s2 + $0x30] sm:$0xff] %v2135_v37 }
0x2d79   :  { %2149 = vsyncpa [#allocation5], 1 }

</bundles_post_ra>
